<compile_context>
chip_gen: v7x
topology: tpu7x:2x2x1
jax: 0.10.0
libtpu: 0.0.40
codegen_flags: <defaults>
</compile_context>

<pallas_src>
import math
from functools import partial

import jax
import jax.numpy as jnp
from jax.experimental import pallas as pl
from jax.experimental.pallas import tpu as pltpu


PAD_ID, BOS_ID, EOS_ID, MASK_ID = 0, 1, 2, 3


# ----------------------------------------------------------------------------
# Pallas kernels
# ----------------------------------------------------------------------------
def _matmul_kernel(x_ref, w_ref, b_ref, o_ref, acc_ref, *, activation):
    """Tiled matmul with K-reduction accumulator: o = act(x @ w + b)."""
    @pl.when(pl.program_id(2) == 0)
    def _():
        acc_ref[...] = jnp.zeros_like(acc_ref)

    acc_ref[...] += jnp.dot(
        x_ref[...], w_ref[...], preferred_element_type=jnp.float32
    )

    @pl.when(pl.program_id(2) == pl.num_programs(2) - 1)
    def _():
        y = acc_ref[...] + b_ref[...]
        if activation == "relu":
            y = jnp.maximum(y, 0.0)
        o_ref[...] = y.astype(o_ref.dtype)


def _add_layernorm_kernel(x_ref, r_ref, g_ref, b_ref, o_ref):
    """Fused residual add + LayerNorm (f32 math, bf16 in/out)."""
    x = x_ref[...].astype(jnp.float32) + r_ref[...].astype(jnp.float32)
    mean = jnp.mean(x, axis=-1, keepdims=True)
    var = jnp.mean(jnp.square(x - mean), axis=-1, keepdims=True)
    y = (x - mean) * jax.lax.rsqrt(var + 1e-5) * g_ref[...] + b_ref[...]
    o_ref[...] = y.astype(o_ref.dtype)


def _mha_kernel(q_ref, k_ref, v_ref, bias_ref, o_ref, *, num_heads):
    """All heads of one batch element per grid step.

    q_ref: (1, Sq, D) bf16   k_ref/v_ref: (1, Sk, D) bf16
    bias_ref: (1, Bq, Sk) f32 additive mask (Bq is 1 or Sq; broadcast in-kernel)
    o_ref: (1, Sq, D) bf16   (single lane-dense store)
    """
    D = q_ref.shape[-1]
    dh = D // num_heads
    scale = 1.0 / math.sqrt(dh)

    q_all = q_ref[0]          # (Sq, D)
    k_all = k_ref[0]          # (Sk, D)
    v_all = v_ref[0]          # (Sk, D)
    bias = bias_ref[0]        # (Bq, Sk) f32

    outs = []
    for h in range(num_heads):
        lo, hi = h * dh, (h + 1) * dh
        # fold 1/sqrt(dh) into q (Sq*dh muls instead of Sq*Sk)
        q_h = (q_all[:, lo:hi].astype(jnp.float32) * scale).astype(jnp.bfloat16)
        k_h = k_all[:, lo:hi]
        v_h = v_all[:, lo:hi]

        # QK^T without an explicit transpose: contract last dims.
        s = jax.lax.dot_general(
            q_h, k_h, (((1,), (1,)), ((), ())),
            preferred_element_type=jnp.float32,
        ) + bias                                          # (Sq, Sk) f32
        s = s - jnp.max(s, axis=-1, keepdims=True)
        p = jnp.exp(s)
        p = p * pl.reciprocal(jnp.sum(p, axis=-1, keepdims=True), approx=True)
        outs.append(
            jnp.dot(p.astype(jnp.bfloat16), v_h,
                    preferred_element_type=jnp.float32)   # (Sq, dh) f32
        )

    o_ref[0] = jnp.concatenate(outs, axis=-1).astype(o_ref.dtype)


# ----------------------------------------------------------------------------
# Pallas wrappers
# ----------------------------------------------------------------------------
def _pick_tile(dim, candidates):
    for c in candidates:
        if dim >= c and dim % c == 0:
            return c
    return dim


def pallas_linear2d(x, w, b, *, activation=None, out_dtype=jnp.bfloat16):
    """y = act(x @ w + b); x:(M,K) bf16, w:(K,N) bf16, b:(N,) f32."""
    M, K = x.shape
    N = w.shape[1]
    tm = _pick_tile(M, (256, 128, 64, 32, 16, 8))
    tn = _pick_tile(N, (512, 256, 128))
    tk = _pick_tile(K, (512, 256, 128))
    grid = (M // tm, N // tn, K // tk)
    return pl.pallas_call(
        partial(_matmul_kernel, activation=activation),
        out_shape=jax.ShapeDtypeStruct((M, N), out_dtype),
        grid=grid,
        in_specs=[
            pl.BlockSpec((tm, tk), lambda i, j, k: (i, k)),
            pl.BlockSpec((tk, tn), lambda i, j, k: (k, j)),
            pl.BlockSpec((1, tn), lambda i, j, k: (0, j)),
        ],
        out_specs=pl.BlockSpec((tm, tn), lambda i, j, k: (i, j)),
        scratch_shapes=[pltpu.VMEM((tm, tn), jnp.float32)],
        compiler_params=pltpu.CompilerParams(
            dimension_semantics=("parallel", "parallel", "arbitrary")
        ),
    )(x, w, b.reshape(1, N))


def linear3d(x, w, b, *, activation=None, out_dtype=jnp.bfloat16):
    B, S, D = x.shape
    y = pallas_linear2d(x.reshape(B * S, D), w, b,
                        activation=activation, out_dtype=out_dtype)
    return y.reshape(B, S, -1)


def add_layernorm(x, res, g, b):
    """LayerNorm(x + res), row-tiled."""
    B, S, D = x.shape
    M = B * S
    tm = _pick_tile(M, (512, 256, 128, 64, 32, 16, 8))
    y = pl.pallas_call(
        _add_layernorm_kernel,
        out_shape=jax.ShapeDtypeStruct((M, D), jnp.bfloat16),
        grid=(M // tm,),
        in_specs=[
            pl.BlockSpec((tm, D), lambda i: (i, 0)),
            pl.BlockSpec((tm, D), lambda i: (i, 0)),
            pl.BlockSpec((1, D), lambda i: (0, 0)),
            pl.BlockSpec((1, D), lambda i: (0, 0)),
        ],
        out_specs=pl.BlockSpec((tm, D), lambda i: (i, 0)),
        compiler_params=pltpu.CompilerParams(dimension_semantics=("parallel",)),
    )(x.reshape(M, D), res.reshape(M, D), g.reshape(1, D), b.reshape(1, D))
    return y.reshape(B, S, D)


def pallas_mha(q, k, v, bias, num_heads):
    """q:(B,Sq,D) bf16, k/v:(B,Sk,D) bf16, bias:(B,Bq,Sk) f32 (Bq in {1,Sq})."""
    B, Sq, D = q.shape
    Sk = k.shape[1]
    Bq = bias.shape[1]
    return pl.pallas_call(
        partial(_mha_kernel, num_heads=num_heads),
        out_shape=jax.ShapeDtypeStruct((B, Sq, D), jnp.bfloat16),
        grid=(B,),
        in_specs=[
            pl.BlockSpec((1, Sq, D), lambda bi: (bi, 0, 0)),
            pl.BlockSpec((1, Sk, D), lambda bi: (bi, 0, 0)),
            pl.BlockSpec((1, Sk, D), lambda bi: (bi, 0, 0)),
            pl.BlockSpec((1, Bq, Sk), lambda bi: (bi, 0, 0)),
        ],
        out_specs=pl.BlockSpec((1, Sq, D), lambda bi: (bi, 0, 0)),
        compiler_params=pltpu.CompilerParams(dimension_semantics=("parallel",)),
    )(q, k, v, bias)


# ----------------------------------------------------------------------------
# Model glue (plain JAX: embeddings, masks, residual wiring, param plumbing)
# ----------------------------------------------------------------------------
def sinusoidal_positions(max_len, d_model):
    pos = jnp.arange(max_len)[:, None].astype(jnp.float32)
    i = jnp.arange(d_model // 2)[None, :].astype(jnp.float32)
    angle = pos / jnp.power(10000.0, 2.0 * i / d_model)
    pe = jnp.zeros((max_len, d_model), jnp.float32)
    pe = pe.at[:, 0::2].set(jnp.sin(angle))
    pe = pe.at[:, 1::2].set(jnp.cos(angle))
    return pe


def padding_bias(tokens, pad_id=PAD_ID):
    """(B, S) -> (B, 1, S) additive key-padding bias (broadcast over queries in-kernel)."""
    valid = tokens != pad_id
    return jnp.where(valid[:, None, :], 0.0, -1e9).astype(jnp.float32)


def combined_bias(tokens, pad_id=PAD_ID):
    """(B, S) -> (B, S, S): key-padding AND causal."""
    B, S = tokens.shape
    pad = (tokens != pad_id)[:, None, :]
    causal = jnp.tril(jnp.ones((S, S), bool))[None]
    return jnp.where(pad & causal, 0.0, -1e9).astype(jnp.float32)


def self_attention(p, x, bias, num_heads):
    D = x.shape[-1]
    qkv = linear3d(x, p["wqkv"], p["bqkv"])                 # fused QKV projection
    q, k, v = qkv[..., :D], qkv[..., D:2 * D], qkv[..., 2 * D:]
    o = pallas_mha(q, k, v, bias, num_heads)
    return linear3d(o, p["wo"], p["bo"])


def cross_attention(p, x_q, enc, bias, num_heads):
    D = x_q.shape[-1]
    q = linear3d(x_q, p["wq"], p["bq"])
    kv = linear3d(enc, p["wkv"], p["bkv"])                  # fused KV projection
    k, v = kv[..., :D], kv[..., D:]
    o = pallas_mha(q, k, v, bias, num_heads)
    return linear3d(o, p["wo"], p["bo"])


def ffn(p, x):
    h = linear3d(x, p["w1"], p["b1"], activation="relu")
    return linear3d(h, p["w2"], p["b2"])


def encoder_layer(p, x, src_bias, num_heads):
    x = add_layernorm(x, self_attention(p["attn"], x, src_bias, num_heads),
                      p["ln1_g"], p["ln1_b"])
    x = add_layernorm(x, ffn(p["ffn"], x), p["ln2_g"], p["ln2_b"])
    return x


def decoder_layer(p, x, enc, src_bias, tgt_bias, num_heads):
    x = add_layernorm(x, self_attention(p["self_attn"], x, tgt_bias, num_heads),
                      p["ln1_g"], p["ln1_b"])
    x = add_layernorm(x, cross_attention(p["cross_attn"], x, enc, src_bias, num_heads),
                      p["ln2_g"], p["ln2_b"])
    x = add_layernorm(x, ffn(p["ffn"], x), p["ln3_g"], p["ln3_b"])
    return x


def sanskrit_llm_forward(params, src, tgt, cfg):
    d_model, num_heads = cfg["d_model"], cfg["num_heads"]
    pe = params["pos_enc"]

    src_bias = padding_bias(src)          # create_padding_mask  (B,1,S_src)
    tgt_bias = combined_bias(tgt)         # create_combined_mask (B,S_tgt,S_tgt)

    # --- encoder ---
    x = (params["enc_emb"][src] * math.sqrt(d_model)
         + pe[None, : src.shape[1]]).astype(jnp.bfloat16)
    for lp in params["enc_layers"]:
        x = encoder_layer(lp, x, src_bias, num_heads)
    encoder_output = x

    # --- decoder ---
    y = (params["dec_emb"][tgt] * math.sqrt(d_model)
         + pe[None, : tgt.shape[1]]).astype(jnp.bfloat16)
    for lp in params["dec_layers"]:
        y = decoder_layer(lp, y, encoder_output, src_bias, tgt_bias, num_heads)
    decoder_output = y

    logits = linear3d(decoder_output, params["out_w"], params["out_b"],
                      out_dtype=jnp.float32)
    return {
        "logits": logits,
        "encoder_output": encoder_output,
        "decoder_output": decoder_output,
    }


# ----------------------------------------------------------------------------
# Deterministic parameter init (normal std=0.02, zero bias); weights bf16
# ----------------------------------------------------------------------------
def init_params(key, cfg):
    d, dff, vocab, L, max_len = (
        cfg["d_model"], cfg["d_ff"], cfg["vocab"], cfg["layers"], cfg["max_len"]
    )
    keys = iter(jax.random.split(key, 4096))

    def lin(in_d, out_d):
        return (jax.random.normal(next(keys), (in_d, out_d), jnp.float32)
                * 0.02).astype(jnp.bfloat16)

    def zeros(n):
        return jnp.zeros((n,), jnp.float32)

    def self_attn_params():
        return {"wqkv": lin(d, 3 * d), "bqkv": zeros(3 * d),
                "wo": lin(d, d), "bo": zeros(d)}

    def cross_attn_params():
        return {"wq": lin(d, d), "bq": zeros(d),
                "wkv": lin(d, 2 * d), "bkv": zeros(2 * d),
                "wo": lin(d, d), "bo": zeros(d)}

    def ffn_params():
        return {"w1": lin(d, dff), "b1": zeros(dff),
                "w2": lin(dff, d), "b2": zeros(d)}

    def enc_layer_params():
        return {"attn": self_attn_params(), "ffn": ffn_params(),
                "ln1_g": jnp.ones((d,), jnp.float32), "ln1_b": zeros(d),
                "ln2_g": jnp.ones((d,), jnp.float32), "ln2_b": zeros(d)}

    def dec_layer_params():
        return {"self_attn": self_attn_params(),
                "cross_attn": cross_attn_params(),
                "ffn": ffn_params(),
                "ln1_g": jnp.ones((d,), jnp.float32), "ln1_b": zeros(d),
                "ln2_g": jnp.ones((d,), jnp.float32), "ln2_b": zeros(d),
                "ln3_g": jnp.ones((d,), jnp.float32), "ln3_b": zeros(d)}

    return {
        "enc_emb": jax.random.normal(next(keys), (vocab, d), jnp.float32) * 0.02,
        "dec_emb": jax.random.normal(next(keys), (vocab, d), jnp.float32) * 0.02,
        "pos_enc": sinusoidal_positions(max_len, d),
        "enc_layers": [enc_layer_params() for _ in range(L)],
        "dec_layers": [dec_layer_params() for _ in range(L)],
        "out_w": lin(d, vocab),
        "out_b": zeros(vocab),
    }


# ----------------------------------------------------------------------------
# Demo
# ----------------------------------------------------------------------------
if __name__ == "__main__":
    cfg = {
        "vocab": 128,
        "d_model": 32,
        "num_heads": 4,
        "d_ff": 64,
        "layers": 2,       # scaled down from 8 for the small demo
        "max_len": 16,
    }
    B, S_SRC, S_TGT = 2, 8, 8

    key = jax.random.PRNGKey(0)
    k_par, k_src, k_tgt = jax.random.split(key, 3)
    params = init_params(k_par, cfg)

    src = jax.random.randint(k_src, (B, S_SRC), 4, cfg["vocab"], dtype=jnp.int32)
    src = src.at[:, -2:].set(PAD_ID)          # some padding to exercise masks
    tgt = jax.random.randint(k_tgt, (B, S_TGT), 4, cfg["vocab"], dtype=jnp.int32)
    tgt = tgt.at[:, 0].set(BOS_ID)
    tgt = tgt.at[:, -1:].set(PAD_ID)

    # TODO(synk): generate_answer() top-k/top-p multinomial sampling loop is host-side
    # control flow and is not implemented as a kernel.
    fwd = jax.jit(partial(sanskrit_llm_forward, cfg=cfg))
    out = fwd(params, src, tgt)
    jax.block_until_ready(out)

    assert out["logits"].shape == (B, S_TGT, cfg["vocab"])
    assert out["encoder_output"].shape == (B, S_SRC, cfg["d_model"])
    assert out["decoder_output"].shape == (B, S_TGT, cfg["d_model"])
    assert bool(jnp.all(jnp.isfinite(out["logits"])))
    print("KERNEL_OK")
</pallas_src>

<mosaic_0001>
module attributes {stable_mosaic.version = 11 : i64} {
  func.func @_matmul_kernel(%arg0: i32, %arg1: i32, %arg2: i32, %arg3: memref<16x32xbf16, #tpu.memory_space<vmem>>, %arg4: memref<32x96xbf16, #tpu.memory_space<vmem>>, %arg5: memref<1x96xf32, #tpu.memory_space<vmem>>, %arg6: memref<16x96xbf16, #tpu.memory_space<vmem>>, %arg7: memref<16x96xf32, #tpu.memory_space<vmem>>) attributes {dimension_semantics = [#tpu.dimension_semantics<parallel>, #tpu.dimension_semantics<parallel>, #tpu.dimension_semantics<arbitrary>], iteration_bounds = array<i64: 1, 1, 1>, scalar_prefetch = 0 : i64, scratch_operands = 1 : i64, tpu.core_type = #tpu.core_type<tc>, window_params = [{transform_indices = @transform_0, window_bounds = array<i64: 16, 32>}, {transform_indices = @transform_1, window_bounds = array<i64: 32, 96>}, {transform_indices = @transform_2, window_bounds = array<i64: 1, 96>}, {transform_indices = @transform_3, window_bounds = array<i64: 16, 96>}]} {
    %c0_i32 = arith.constant 0 : i32
    %0 = arith.cmpi eq, %arg2, %c0_i32 : i32
    %1 = arith.extui %0 : i1 to i32
    %c0_i32_0 = arith.constant 0 : i32
    %2 = arith.cmpi ne, %1, %c0_i32_0 : i32
    scf.if %2 {
      %cst_10 = arith.constant 0.000000e+00 : f32
      %12 = vector.broadcast %cst_10 : f32 to vector<16x96xf32>
      %c0_11 = arith.constant 0 : index
      %c0_12 = arith.constant 0 : index
      %13 = vector.load %arg7[%c0_11, %c0_12] : memref<16x96xf32, #tpu.memory_space<vmem>>, vector<16x96xf32>
      tpu.vector_store %arg7[%c0_11, %c0_12], %12 {strides = array<i32>} : memref<16x96xf32, #tpu.memory_space<vmem>>, vector<16x96xf32>,
    } else {
    }
    %c0 = arith.constant 0 : index
    %c0_1 = arith.constant 0 : index
    %3 = vector.load %arg7[%c0, %c0_1] : memref<16x96xf32, #tpu.memory_space<vmem>>, vector<16x96xf32>
    %c0_2 = arith.constant 0 : index
    %c0_3 = arith.constant 0 : index
    %4 = vector.load %arg3[%c0_2, %c0_3] : memref<16x32xbf16, #tpu.memory_space<vmem>>, vector<16x32xbf16>
    %c0_4 = arith.constant 0 : index
    %c0_5 = arith.constant 0 : index
    %5 = vector.load %arg4[%c0_4, %c0_5] : memref<32x96xbf16, #tpu.memory_space<vmem>>, vector<32x96xbf16>
    %cst = arith.constant dense<0.000000e+00> : vector<16x96xf32>
    %6 = tpu.matmul %4, %5, %cst {dimension_numbers = #tpu.dot_dimension_numbers<[1], [0], [0], [1], [0, 0, 1, 1], [], []>} : vector<16x32xbf16>, vector<32x96xbf16>, vector<16x96xf32> -> vector<16x96xf32>
    %7 = arith.addf %3, %6 : vector<16x96xf32>
    %c0_6 = arith.constant 0 : index
    %c0_7 = arith.constant 0 : index
    %8 = vector.load %arg7[%c0_6, %c0_7] : memref<16x96xf32, #tpu.memory_space<vmem>>, vector<16x96xf32>
    tpu.vector_store %arg7[%c0_6, %c0_7], %7 {strides = array<i32>} : memref<16x96xf32, #tpu.memory_space<vmem>>, vector<16x96xf32>,
    %c0_i32_8 = arith.constant 0 : i32
    %9 = arith.cmpi eq, %arg2, %c0_i32_8 : i32
    %10 = arith.extui %9 : i1 to i32
    %c0_i32_9 = arith.constant 0 : i32
    %11 = arith.cmpi ne, %10, %c0_i32_9 : i32
    scf.if %11 {
      %c0_10 = arith.constant 0 : index
      %c0_11 = arith.constant 0 : index
      %12 = vector.load %arg7[%c0_10, %c0_11] : memref<16x96xf32, #tpu.memory_space<vmem>>, vector<16x96xf32>
      %c0_12 = arith.constant 0 : index
      %c0_13 = arith.constant 0 : index
      %13 = vector.load %arg5[%c0_12, %c0_13] : memref<1x96xf32, #tpu.memory_space<vmem>>, vector<1x96xf32>
      %14 = vector.broadcast %13 : vector<1x96xf32> to vector<16x96xf32>
      %15 = arith.addf %12, %14 : vector<16x96xf32>
      %16 = arith.truncf %15 : vector<16x96xf32> to vector<16x96xbf16>
      %c0_14 = arith.constant 0 : index
      %c0_15 = arith.constant 0 : index
      %17 = vector.load %arg6[%c0_14, %c0_15] : memref<16x96xbf16, #tpu.memory_space<vmem>>, vector<16x96xbf16>
      tpu.vector_store %arg6[%c0_14, %c0_15], %16 {strides = array<i32>} : memref<16x96xbf16, #tpu.memory_space<vmem>>, vector<16x96xbf16>,
    } else {
    }
    return
  }
  func.func @transform_0(%arg0: i32, %arg1: i32, %arg2: i32) -> (i32, i32) {
    %c0_i32 = arith.constant 0 : i32
    return %arg0, %arg2 : i32, i32
  }
  func.func @transform_1(%arg0: i32, %arg1: i32, %arg2: i32) -> (i32, i32) {
    %c0_i32 = arith.constant 0 : i32
    return %arg2, %arg1 : i32, i32
  }
  func.func @transform_2(%arg0: i32, %arg1: i32, %arg2: i32) -> (i32, i32) {
    %c0_i32 = arith.constant 0 : i32
    %c0_i32_0 = arith.constant 0 : i32
    return %c0_i32, %arg1 : i32, i32
  }
  func.func @transform_3(%arg0: i32, %arg1: i32, %arg2: i32) -> (i32, i32) {
    %c0_i32 = arith.constant 0 : i32
    return %arg0, %arg1 : i32, i32
  }
}

module attributes {stable_mosaic.version = 11 : i64} {
  func.func @_matmul_kernel(%arg0: i32, %arg1: i32, %arg2: i32, %arg3: memref<16x32xbf16, #tpu.memory_space<vmem>>, %arg4: memref<32x32xbf16, #tpu.memory_space<vmem>>, %arg5: memref<1x32xf32, #tpu.memory_space<vmem>>, %arg6: memref<16x32xbf16, #tpu.memory_space<vmem>>, %arg7: memref<16x32xf32, #tpu.memory_space<vmem>>) attributes {dimension_semantics = [#tpu.dimension_semantics<parallel>, #tpu.dimension_semantics<parallel>, #tpu.dimension_semantics<arbitrary>], iteration_bounds = array<i64: 1, 1, 1>, scalar_prefetch = 0 : i64, scratch_operands = 1 : i64, tpu.core_type = #tpu.core_type<tc>, window_params = [{transform_indices = @transform_0, window_bounds = array<i64: 16, 32>}, {transform_indices = @transform_1, window_bounds = array<i64: 32, 32>}, {transform_indices = @transform_2, window_bounds = array<i64: 1, 32>}, {transform_indices = @transform_3, window_bounds = array<i64: 16, 32>}]} {
    %c0_i32 = arith.constant 0 : i32
    %0 = arith.cmpi eq, %arg2, %c0_i32 : i32
    %1 = arith.extui %0 : i1 to i32
    %c0_i32_0 = arith.constant 0 : i32
    %2 = arith.cmpi ne, %1, %c0_i32_0 : i32
    scf.if %2 {
      %cst_10 = arith.constant 0.000000e+00 : f32
      %12 = vector.broadcast %cst_10 : f32 to vector<16x32xf32>
      %c0_11 = arith.constant 0 : index
      %c0_12 = arith.constant 0 : index
      %13 = vector.load %arg7[%c0_11, %c0_12] : memref<16x32xf32, #tpu.memory_space<vmem>>, vector<16x32xf32>
      tpu.vector_store %arg7[%c0_11, %c0_12], %12 {strides = array<i32>} : memref<16x32xf32, #tpu.memory_space<vmem>>, vector<16x32xf32>,
    } else {
    }
    %c0 = arith.constant 0 : index
    %c0_1 = arith.constant 0 : index
    %3 = vector.load %arg7[%c0, %c0_1] : memref<16x32xf32, #tpu.memory_space<vmem>>, vector<16x32xf32>
    %c0_2 = arith.constant 0 : index
    %c0_3 = arith.constant 0 : index
    %4 = vector.load %arg3[%c0_2, %c0_3] : memref<16x32xbf16, #tpu.memory_space<vmem>>, vector<16x32xbf16>
    %c0_4 = arith.constant 0 : index
    %c0_5 = arith.constant 0 : index
    %5 = vector.load %arg4[%c0_4, %c0_5] : memref<32x32xbf16, #tpu.memory_space<vmem>>, vector<32x32xbf16>
    %cst = arith.constant dense<0.000000e+00> : vector<16x32xf32>
    %6 = tpu.matmul %4, %5, %cst {dimension_numbers = #tpu.dot_dimension_numbers<[1], [0], [0], [1], [0, 0, 1, 1], [], []>} : vector<16x32xbf16>, vector<32x32xbf16>, vector<16x32xf32> -> vector<16x32xf32>
    %7 = arith.addf %3, %6 : vector<16x32xf32>
    %c0_6 = arith.constant 0 : index
    %c0_7 = arith.constant 0 : index
    %8 = vector.load %arg7[%c0_6, %c0_7] : memref<16x32xf32, #tpu.memory_space<vmem>>, vector<16x32xf32>
    tpu.vector_store %arg7[%c0_6, %c0_7], %7 {strides = array<i32>} : memref<16x32xf32, #tpu.memory_space<vmem>>, vector<16x32xf32>,
    %c0_i32_8 = arith.constant 0 : i32
    %9 = arith.cmpi eq, %arg2, %c0_i32_8 : i32
    %10 = arith.extui %9 : i1 to i32
    %c0_i32_9 = arith.constant 0 : i32
    %11 = arith.cmpi ne, %10, %c0_i32_9 : i32
    scf.if %11 {
      %c0_10 = arith.constant 0 : index
      %c0_11 = arith.constant 0 : index
      %12 = vector.load %arg7[%c0_10, %c0_11] : memref<16x32xf32, #tpu.memory_space<vmem>>, vector<16x32xf32>
      %c0_12 = arith.constant 0 : index
      %c0_13 = arith.constant 0 : index
      %13 = vector.load %arg5[%c0_12, %c0_13] : memref<1x32xf32, #tpu.memory_space<vmem>>, vector<1x32xf32>
      %14 = vector.broadcast %13 : vector<1x32xf32> to vector<16x32xf32>
      %15 = arith.addf %12, %14 : vector<16x32xf32>
      %16 = arith.truncf %15 : vector<16x32xf32> to vector<16x32xbf16>
      %c0_14 = arith.constant 0 : index
      %c0_15 = arith.constant 0 : index
      %17 = vector.load %arg6[%c0_14, %c0_15] : memref<16x32xbf16, #tpu.memory_space<vmem>>, vector<16x32xbf16>
      tpu.vector_store %arg6[%c0_14, %c0_15], %16 {strides = array<i32>} : memref<16x32xbf16, #tpu.memory_space<vmem>>, vector<16x32xbf16>,
    } else {
    }
    return
  }
  func.func @transform_0(%arg0: i32, %arg1: i32, %arg2: i32) -> (i32, i32) {
    %c0_i32 = arith.constant 0 : i32
    return %arg0, %arg2 : i32, i32
  }
  func.func @transform_1(%arg0: i32, %arg1: i32, %arg2: i32) -> (i32, i32) {
    %c0_i32 = arith.constant 0 : i32
    return %arg2, %arg1 : i32, i32
  }
  func.func @transform_2(%arg0: i32, %arg1: i32, %arg2: i32) -> (i32, i32) {
    %c0_i32 = arith.constant 0 : i32
    %c0_i32_0 = arith.constant 0 : i32
    return %c0_i32, %arg1 : i32, i32
  }
  func.func @transform_3(%arg0: i32, %arg1: i32, %arg2: i32) -> (i32, i32) {
    %c0_i32 = arith.constant 0 : i32
    return %arg0, %arg1 : i32, i32
  }
}

module attributes {stable_mosaic.version = 11 : i64} {
  func.func @_mha_kernel(%arg0: i32, %arg1: memref<1x8x32xbf16, #tpu.memory_space<vmem>>, %arg2: memref<1x8x32xbf16, #tpu.memory_space<vmem>>, %arg3: memref<1x8x32xbf16, #tpu.memory_space<vmem>>, %arg4: memref<1x1x8xf32, #tpu.memory_space<vmem>>, %arg5: memref<1x8x32xbf16, #tpu.memory_space<vmem>>) attributes {dimension_semantics = [#tpu.dimension_semantics<parallel>], iteration_bounds = array<i64: 2>, scalar_prefetch = 0 : i64, scratch_operands = 0 : i64, tpu.core_type = #tpu.core_type<tc>, window_params = [{transform_indices = @transform_0, window_bounds = array<i64: 1, 8, 32>}, {transform_indices = @transform_1, window_bounds = array<i64: 1, 8, 32>}, {transform_indices = @transform_2, window_bounds = array<i64: 1, 8, 32>}, {transform_indices = @transform_3, window_bounds = array<i64: 1, 1, 8>}, {transform_indices = @transform_4, window_bounds = array<i64: 1, 8, 32>}]} {
    %c0 = arith.constant 0 : index
    %c0_0 = arith.constant 0 : index
    %c0_1 = arith.constant 0 : index
    %0 = vector.load %arg1[%c0, %c0_0, %c0_1] : memref<1x8x32xbf16, #tpu.memory_space<vmem>>, vector<1x8x32xbf16>
    %1 = vector.shape_cast %0 : vector<1x8x32xbf16> to vector<8x32xbf16>
    %c0_2 = arith.constant 0 : index
    %c0_3 = arith.constant 0 : index
    %c0_4 = arith.constant 0 : index
    %2 = vector.load %arg2[%c0_2, %c0_3, %c0_4] : memref<1x8x32xbf16, #tpu.memory_space<vmem>>, vector<1x8x32xbf16>
    %3 = vector.shape_cast %2 : vector<1x8x32xbf16> to vector<8x32xbf16>
    %c0_5 = arith.constant 0 : index
    %c0_6 = arith.constant 0 : index
    %c0_7 = arith.constant 0 : index
    %4 = vector.load %arg3[%c0_5, %c0_6, %c0_7] : memref<1x8x32xbf16, #tpu.memory_space<vmem>>, vector<1x8x32xbf16>
    %5 = vector.shape_cast %4 : vector<1x8x32xbf16> to vector<8x32xbf16>
    %c0_8 = arith.constant 0 : index
    %c0_9 = arith.constant 0 : index
    %c0_10 = arith.constant 0 : index
    %6 = vector.load %arg4[%c0_8, %c0_9, %c0_10] : memref<1x1x8xf32, #tpu.memory_space<vmem>>, vector<1x1x8xf32>
    %7 = vector.shape_cast %6 : vector<1x1x8xf32> to vector<1x8xf32>
    %8 = vector.extract_strided_slice %1 {offsets = [0, 0], sizes = [8, 8], strides = [1, 1]} : vector<8x32xbf16> to vector<8x8xbf16>
    %9 = arith.extf %8 : vector<8x8xbf16> to vector<8x8xf32>
    %cst = arith.constant 0.353553385 : f32
    %10 = vector.broadcast %cst : f32 to vector<8x8xf32>
    %11 = arith.mulf %9, %10 : vector<8x8xf32>
    %12 = arith.truncf %11 : vector<8x8xf32> to vector<8x8xbf16>
    %13 = vector.extract_strided_slice %3 {offsets = [0, 0], sizes = [8, 8], strides = [1, 1]} : vector<8x32xbf16> to vector<8x8xbf16>
    %14 = vector.extract_strided_slice %5 {offsets = [0, 0], sizes = [8, 8], strides = [1, 1]} : vector<8x32xbf16> to vector<8x8xbf16>
    %cst_11 = arith.constant dense<0.000000e+00> : vector<8x8xf32>
    %15 = tpu.matmul %12, %13, %cst_11 {dimension_numbers = #tpu.dot_dimension_numbers<[1], [1], [0], [0], [0, 0, 1, 0], [], []>} : vector<8x8xbf16>, vector<8x8xbf16>, vector<8x8xf32> -> vector<8x8xf32>
    %16 = vector.broadcast %7 : vector<1x8xf32> to vector<8x8xf32>
    %17 = arith.addf %15, %16 : vector<8x8xf32>
    %cst_12 = arith.constant dense<0xFF800000> : vector<8xf32>
    %18 = vector.multi_reduction <maximumf>, %17, %cst_12 [1] : vector<8x8xf32> to vector<8xf32>
    %19 = vector.shape_cast %18 : vector<8xf32> to vector<8x1xf32>
    %20 = vector.broadcast %19 : vector<8x1xf32> to vector<8x8xf32>
    %21 = arith.subf %17, %20 : vector<8x8xf32>
    %22 = math.exp %21 : vector<8x8xf32>
    %cst_13 = arith.constant dense<0.000000e+00> : vector<8xf32>
    %23 = vector.multi_reduction <add>, %22, %cst_13 [1] : vector<8x8xf32> to vector<8xf32>
    %24 = vector.shape_cast %23 : vector<8xf32> to vector<8x1xf32>
    %25 = tpu.reciprocal %24 {approx = true} : vector<8x1xf32> -> vector<8x1xf32>
    %26 = vector.broadcast %25 : vector<8x1xf32> to vector<8x8xf32>
    %27 = arith.mulf %22, %26 : vector<8x8xf32>
    %28 = arith.truncf %27 : vector<8x8xf32> to vector<8x8xbf16>
    %cst_14 = arith.constant dense<0.000000e+00> : vector<8x8xf32>
    %29 = tpu.matmul %28, %14, %cst_14 {dimension_numbers = #tpu.dot_dimension_numbers<[1], [0], [0], [1], [0, 0, 1, 1], [], []>} : vector<8x8xbf16>, vector<8x8xbf16>, vector<8x8xf32> -> vector<8x8xf32>
    %30 = vector.extract_strided_slice %1 {offsets = [0, 8], sizes = [8, 8], strides = [1, 1]} : vector<8x32xbf16> to vector<8x8xbf16>
    %31 = arith.extf %30 : vector<8x8xbf16> to vector<8x8xf32>
    %cst_15 = arith.constant 0.353553385 : f32
    %32 = vector.broadcast %cst_15 : f32 to vector<8x8xf32>
    %33 = arith.mulf %31, %32 : vector<8x8xf32>
    %34 = arith.truncf %33 : vector<8x8xf32> to vector<8x8xbf16>
    %35 = vector.extract_strided_slice %3 {offsets = [0, 8], sizes = [8, 8], strides = [1, 1]} : vector<8x32xbf16> to vector<8x8xbf16>
    %36 = vector.extract_strided_slice %5 {offsets = [0, 8], sizes = [8, 8], strides = [1, 1]} : vector<8x32xbf16> to vector<8x8xbf16>
    %cst_16 = arith.constant dense<0.000000e+00> : vector<8x8xf32>
    %37 = tpu.matmul %34, %35, %cst_16 {dimension_numbers = #tpu.dot_dimension_numbers<[1], [1], [0], [0], [0, 0, 1, 0], [], []>} : vector<8x8xbf16>, vector<8x8xbf16>, vector<8x8xf32> -> vector<8x8xf32>
    %38 = vector.broadcast %7 : vector<1x8xf32> to vector<8x8xf32>
    %39 = arith.addf %37, %38 : vector<8x8xf32>
    %cst_17 = arith.constant dense<0xFF800000> : vector<8xf32>
    %40 = vector.multi_reduction <maximumf>, %39, %cst_17 [1] : vector<8x8xf32> to vector<8xf32>
    %41 = vector.shape_cast %40 : vector<8xf32> to vector<8x1xf32>
    %42 = vector.broadcast %41 : vector<8x1xf32> to vector<8x8xf32>
    %43 = arith.subf %39, %42 : vector<8x8xf32>
    %44 = math.exp %43 : vector<8x8xf32>
    %cst_18 = arith.constant dense<0.000000e+00> : vector<8xf32>
    %45 = vector.multi_reduction <add>, %44, %cst_18 [1] : vector<8x8xf32> to vector<8xf32>
    %46 = vector.shape_cast %45 : vector<8xf32> to vector<8x1xf32>
    %47 = tpu.reciprocal %46 {approx = true} : vector<8x1xf32> -> vector<8x1xf32>
    %48 = vector.broadcast %47 : vector<8x1xf32> to vector<8x8xf32>
    %49 = arith.mulf %44, %48 : vector<8x8xf32>
    %50 = arith.truncf %49 : vector<8x8xf32> to vector<8x8xbf16>
    %cst_19 = arith.constant dense<0.000000e+00> : vector<8x8xf32>
    %51 = tpu.matmul %50, %36, %cst_19 {dimension_numbers = #tpu.dot_dimension_numbers<[1], [0], [0], [1], [0, 0, 1, 1], [], []>} : vector<8x8xbf16>, vector<8x8xbf16>, vector<8x8xf32> -> vector<8x8xf32>
    %52 = vector.extract_strided_slice %1 {offsets = [0, 16], sizes = [8, 8], strides = [1, 1]} : vector<8x32xbf16> to vector<8x8xbf16>
    %53 = arith.extf %52 : vector<8x8xbf16> to vector<8x8xf32>
    %cst_20 = arith.constant 0.353553385 : f32
    %54 = vector.broadcast %cst_20 : f32 to vector<8x8xf32>
    %55 = arith.mulf %53, %54 : vector<8x8xf32>
    %56 = arith.truncf %55 : vector<8x8xf32> to vector<8x8xbf16>
    %57 = vector.extract_strided_slice %3 {offsets = [0, 16], sizes = [8, 8], strides = [1, 1]} : vector<8x32xbf16> to vector<8x8xbf16>
    %58 = vector.extract_strided_slice %5 {offsets = [0, 16], sizes = [8, 8], strides = [1, 1]} : vector<8x32xbf16> to vector<8x8xbf16>
    %cst_21 = arith.constant dense<0.000000e+00> : vector<8x8xf32>
    %59 = tpu.matmul %56, %57, %cst_21 {dimension_numbers = #tpu.dot_dimension_numbers<[1], [1], [0], [0], [0, 0, 1, 0], [], []>} : vector<8x8xbf16>, vector<8x8xbf16>, vector<8x8xf32> -> vector<8x8xf32>
    %60 = vector.broadcast %7 : vector<1x8xf32> to vector<8x8xf32>
    %61 = arith.addf %59, %60 : vector<8x8xf32>
    %cst_22 = arith.constant dense<0xFF800000> : vector<8xf32>
    %62 = vector.multi_reduction <maximumf>, %61, %cst_22 [1] : vector<8x8xf32> to vector<8xf32>
    %63 = vector.shape_cast %62 : vector<8xf32> to vector<8x1xf32>
    %64 = vector.broadcast %63 : vector<8x1xf32> to vector<8x8xf32>
    %65 = arith.subf %61, %64 : vector<8x8xf32>
    %66 = math.exp %65 : vector<8x8xf32>
    %cst_23 = arith.constant dense<0.000000e+00> : vector<8xf32>
    %67 = vector.multi_reduction <add>, %66, %cst_23 [1] : vector<8x8xf32> to vector<8xf32>
    %68 = vector.shape_cast %67 : vector<8xf32> to vector<8x1xf32>
    %69 = tpu.reciprocal %68 {approx = true} : vector<8x1xf32> -> vector<8x1xf32>
    %70 = vector.broadcast %69 : vector<8x1xf32> to vector<8x8xf32>
    %71 = arith.mulf %66, %70 : vector<8x8xf32>
    %72 = arith.truncf %71 : vector<8x8xf32> to vector<8x8xbf16>
    %cst_24 = arith.constant dense<0.000000e+00> : vector<8x8xf32>
    %73 = tpu.matmul %72, %58, %cst_24 {dimension_numbers = #tpu.dot_dimension_numbers<[1], [0], [0], [1], [0, 0, 1, 1], [], []>} : vector<8x8xbf16>, vector<8x8xbf16>, vector<8x8xf32> -> vector<8x8xf32>
    %74 = vector.extract_strided_slice %1 {offsets = [0, 24], sizes = [8, 8], strides = [1, 1]} : vector<8x32xbf16> to vector<8x8xbf16>
    %75 = arith.extf %74 : vector<8x8xbf16> to vector<8x8xf32>
    %cst_25 = arith.constant 0.353553385 : f32
    %76 = vector.broadcast %cst_25 : f32 to vector<8x8xf32>
    %77 = arith.mulf %75, %76 : vector<8x8xf32>
    %78 = arith.truncf %77 : vector<8x8xf32> to vector<8x8xbf16>
    %79 = vector.extract_strided_slice %3 {offsets = [0, 24], sizes = [8, 8], strides = [1, 1]} : vector<8x32xbf16> to vector<8x8xbf16>
    %80 = vector.extract_strided_slice %5 {offsets = [0, 24], sizes = [8, 8], strides = [1, 1]} : vector<8x32xbf16> to vector<8x8xbf16>
    %cst_26 = arith.constant dense<0.000000e+00> : vector<8x8xf32>
    %81 = tpu.matmul %78, %79, %cst_26 {dimension_numbers = #tpu.dot_dimension_numbers<[1], [1], [0], [0], [0, 0, 1, 0], [], []>} : vector<8x8xbf16>, vector<8x8xbf16>, vector<8x8xf32> -> vector<8x8xf32>
    %82 = vector.broadcast %7 : vector<1x8xf32> to vector<8x8xf32>
    %83 = arith.addf %81, %82 : vector<8x8xf32>
    %cst_27 = arith.constant dense<0xFF800000> : vector<8xf32>
    %84 = vector.multi_reduction <maximumf>, %83, %cst_27 [1] : vector<8x8xf32> to vector<8xf32>
    %85 = vector.shape_cast %84 : vector<8xf32> to vector<8x1xf32>
    %86 = vector.broadcast %85 : vector<8x1xf32> to vector<8x8xf32>
    %87 = arith.subf %83, %86 : vector<8x8xf32>
    %88 = math.exp %87 : vector<8x8xf32>
    %cst_28 = arith.constant dense<0.000000e+00> : vector<8xf32>
    %89 = vector.multi_reduction <add>, %88, %cst_28 [1] : vector<8x8xf32> to vector<8xf32>
    %90 = vector.shape_cast %89 : vector<8xf32> to vector<8x1xf32>
    %91 = tpu.reciprocal %90 {approx = true} : vector<8x1xf32> -> vector<8x1xf32>
    %92 = vector.broadcast %91 : vector<8x1xf32> to vector<8x8xf32>
    %93 = arith.mulf %88, %92 : vector<8x8xf32>
    %94 = arith.truncf %93 : vector<8x8xf32> to vector<8x8xbf16>
    %cst_29 = arith.constant dense<0.000000e+00> : vector<8x8xf32>
    %95 = tpu.matmul %94, %80, %cst_29 {dimension_numbers = #tpu.dot_dimension_numbers<[1], [0], [0], [1], [0, 0, 1, 1], [], []>} : vector<8x8xbf16>, vector<8x8xbf16>, vector<8x8xf32> -> vector<8x8xf32>
    %96 = tpu.concatenate %29, %51, %73, %95 in 1 : vector<8x8xf32>, vector<8x8xf32>, vector<8x8xf32>, vector<8x8xf32> -> vector<8x32xf32>
    %97 = arith.truncf %96 : vector<8x32xf32> to vector<8x32xbf16>
    %c0_30 = arith.constant 0 : index
    %c0_31 = arith.constant 0 : index
    %c0_32 = arith.constant 0 : index
    %98 = vector.load %arg5[%c0_30, %c0_31, %c0_32] : memref<1x8x32xbf16, #tpu.memory_space<vmem>>, vector<1x8x32xbf16>
    %99 = vector.shape_cast %98 : vector<1x8x32xbf16> to vector<8x32xbf16>
    %100 = vector.shape_cast %97 : vector<8x32xbf16> to vector<1x8x32xbf16>
    tpu.vector_store %arg5[%c0_30, %c0_31, %c0_32], %100 {strides = array<i32>} : memref<1x8x32xbf16, #tpu.memory_space<vmem>>, vector<1x8x32xbf16>,
    return
  }
  func.func @transform_0(%arg0: i32) -> (i32, i32, i32) {
    %c0_i32 = arith.constant 0 : i32
    %c0_i32_0 = arith.constant 0 : i32
    %c0_i32_1 = arith.constant 0 : i32
    return %arg0, %c0_i32, %c0_i32_0 : i32, i32, i32
  }
  func.func @transform_1(%arg0: i32) -> (i32, i32, i32) {
    %c0_i32 = arith.constant 0 : i32
    %c0_i32_0 = arith.constant 0 : i32
    %c0_i32_1 = arith.constant 0 : i32
    return %arg0, %c0_i32, %c0_i32_0 : i32, i32, i32
  }
  func.func @transform_2(%arg0: i32) -> (i32, i32, i32) {
    %c0_i32 = arith.constant 0 : i32
    %c0_i32_0 = arith.constant 0 : i32
    %c0_i32_1 = arith.constant 0 : i32
    return %arg0, %c0_i32, %c0_i32_0 : i32, i32, i32
  }
  func.func @transform_3(%arg0: i32) -> (i32, i32, i32) {
    %c0_i32 = arith.constant 0 : i32
    %c0_i32_0 = arith.constant 0 : i32
    %c0_i32_1 = arith.constant 0 : i32
    return %arg0, %c0_i32, %c0_i32_0 : i32, i32, i32
  }
  func.func @transform_4(%arg0: i32) -> (i32, i32, i32) {
    %c0_i32 = arith.constant 0 : i32
    %c0_i32_0 = arith.constant 0 : i32
    %c0_i32_1 = arith.constant 0 : i32
    return %arg0, %c0_i32, %c0_i32_0 : i32, i32, i32
  }
}

module attributes {stable_mosaic.version = 11 : i64} {
  func.func @_add_layernorm_kernel(%arg0: i32, %arg1: memref<16x32xbf16, #tpu.memory_space<vmem>>, %arg2: memref<16x32xbf16, #tpu.memory_space<vmem>>, %arg3: memref<1x32xf32, #tpu.memory_space<vmem>>, %arg4: memref<1x32xf32, #tpu.memory_space<vmem>>, %arg5: memref<16x32xbf16, #tpu.memory_space<vmem>>) attributes {dimension_semantics = [#tpu.dimension_semantics<parallel>], iteration_bounds = array<i64: 1>, scalar_prefetch = 0 : i64, scratch_operands = 0 : i64, tpu.core_type = #tpu.core_type<tc>, window_params = [{transform_indices = @transform_0, window_bounds = array<i64: 16, 32>}, {transform_indices = @transform_1, window_bounds = array<i64: 16, 32>}, {pipeline_mode = #tpu.pipeline_mode<synchronous>, transform_indices = @transform_2, window_bounds = array<i64: 1, 32>}, {pipeline_mode = #tpu.pipeline_mode<synchronous>, transform_indices = @transform_3, window_bounds = array<i64: 1, 32>}, {transform_indices = @transform_4, window_bounds = array<i64: 16, 32>}]} {
    %c0 = arith.constant 0 : index
    %c0_0 = arith.constant 0 : index
    %0 = vector.load %arg1[%c0, %c0_0] : memref<16x32xbf16, #tpu.memory_space<vmem>>, vector<16x32xbf16>
    %1 = arith.extf %0 : vector<16x32xbf16> to vector<16x32xf32>
    %c0_1 = arith.constant 0 : index
    %c0_2 = arith.constant 0 : index
    %2 = vector.load %arg2[%c0_1, %c0_2] : memref<16x32xbf16, #tpu.memory_space<vmem>>, vector<16x32xbf16>
    %3 = arith.extf %2 : vector<16x32xbf16> to vector<16x32xf32>
    %4 = arith.addf %1, %3 : vector<16x32xf32>
    %cst = arith.constant dense<0.000000e+00> : vector<16xf32>
    %5 = vector.multi_reduction <add>, %4, %cst [1] : vector<16x32xf32> to vector<16xf32>
    %6 = vector.shape_cast %5 : vector<16xf32> to vector<16x1xf32>
    %cst_3 = arith.constant 3.200000e+01 : f32
    %7 = vector.broadcast %cst_3 : f32 to vector<16x1xf32>
    %8 = arith.divf %6, %7 : vector<16x1xf32>
    %9 = vector.broadcast %8 : vector<16x1xf32> to vector<16x32xf32>
    %10 = arith.subf %4, %9 : vector<16x32xf32>
    %11 = arith.mulf %10, %10 : vector<16x32xf32>
    %cst_4 = arith.constant dense<0.000000e+00> : vector<16xf32>
    %12 = vector.multi_reduction <add>, %11, %cst_4 [1] : vector<16x32xf32> to vector<16xf32>
    %13 = vector.shape_cast %12 : vector<16xf32> to vector<16x1xf32>
    %cst_5 = arith.constant 3.200000e+01 : f32
    %14 = vector.broadcast %cst_5 : f32 to vector<16x1xf32>
    %15 = arith.divf %13, %14 : vector<16x1xf32>
    %16 = vector.broadcast %8 : vector<16x1xf32> to vector<16x32xf32>
    %17 = arith.subf %4, %16 : vector<16x32xf32>
    %cst_6 = arith.constant 9.99999974E-6 : f32
    %18 = vector.broadcast %cst_6 : f32 to vector<16x1xf32>
    %19 = arith.addf %15, %18 : vector<16x1xf32>
    %20 = math.rsqrt %19 : vector<16x1xf32>
    %21 = vector.broadcast %20 : vector<16x1xf32> to vector<16x32xf32>
    %22 = arith.mulf %17, %21 : vector<16x32xf32>
    %c0_7 = arith.constant 0 : index
    %c0_8 = arith.constant 0 : index
    %23 = vector.load %arg3[%c0_7, %c0_8] : memref<1x32xf32, #tpu.memory_space<vmem>>, vector<1x32xf32>
    %24 = vector.broadcast %23 : vector<1x32xf32> to vector<16x32xf32>
    %25 = arith.mulf %22, %24 : vector<16x32xf32>
    %c0_9 = arith.constant 0 : index
    %c0_10 = arith.constant 0 : index
    %26 = vector.load %arg4[%c0_9, %c0_10] : memref<1x32xf32, #tpu.memory_space<vmem>>, vector<1x32xf32>
    %27 = vector.broadcast %26 : vector<1x32xf32> to vector<16x32xf32>
    %28 = arith.addf %25, %27 : vector<16x32xf32>
    %29 = arith.truncf %28 : vector<16x32xf32> to vector<16x32xbf16>
    %c0_11 = arith.constant 0 : index
    %c0_12 = arith.constant 0 : index
    %30 = vector.load %arg5[%c0_11, %c0_12] : memref<16x32xbf16, #tpu.memory_space<vmem>>, vector<16x32xbf16>
    tpu.vector_store %arg5[%c0_11, %c0_12], %29 {strides = array<i32>} : memref<16x32xbf16, #tpu.memory_space<vmem>>, vector<16x32xbf16>,
    return
  }
  func.func @transform_0(%arg0: i32) -> (i32, i32) {
    %c0_i32 = arith.constant 0 : i32
    %c0_i32_0 = arith.constant 0 : i32
    return %arg0, %c0_i32 : i32, i32
  }
  func.func @transform_1(%arg0: i32) -> (i32, i32) {
    %c0_i32 = arith.constant 0 : i32
    %c0_i32_0 = arith.constant 0 : i32
    return %arg0, %c0_i32 : i32, i32
  }
  func.func @transform_2(%arg0: i32) -> (i32, i32) {
    %c0_i32 = arith.constant 0 : i32
    %c0_i32_0 = arith.constant 0 : i32
    %c0_i32_1 = arith.constant 0 : i32
    return %c0_i32, %c0_i32_0 : i32, i32
  }
  func.func @transform_3(%arg0: i32) -> (i32, i32) {
    %c0_i32 = arith.constant 0 : i32
    %c0_i32_0 = arith.constant 0 : i32
    %c0_i32_1 = arith.constant 0 : i32
    return %c0_i32, %c0_i32_0 : i32, i32
  }
  func.func @transform_4(%arg0: i32) -> (i32, i32) {
    %c0_i32 = arith.constant 0 : i32
    %c0_i32_0 = arith.constant 0 : i32
    return %arg0, %c0_i32 : i32, i32
  }
}

module attributes {stable_mosaic.version = 11 : i64} {
  func.func @_matmul_kernel(%arg0: i32, %arg1: i32, %arg2: i32, %arg3: memref<16x32xbf16, #tpu.memory_space<vmem>>, %arg4: memref<32x64xbf16, #tpu.memory_space<vmem>>, %arg5: memref<1x64xf32, #tpu.memory_space<vmem>>, %arg6: memref<16x64xbf16, #tpu.memory_space<vmem>>, %arg7: memref<16x64xf32, #tpu.memory_space<vmem>>) attributes {dimension_semantics = [#tpu.dimension_semantics<parallel>, #tpu.dimension_semantics<parallel>, #tpu.dimension_semantics<arbitrary>], iteration_bounds = array<i64: 1, 1, 1>, scalar_prefetch = 0 : i64, scratch_operands = 1 : i64, tpu.core_type = #tpu.core_type<tc>, window_params = [{transform_indices = @transform_0, window_bounds = array<i64: 16, 32>}, {transform_indices = @transform_1, window_bounds = array<i64: 32, 64>}, {transform_indices = @transform_2, window_bounds = array<i64: 1, 64>}, {transform_indices = @transform_3, window_bounds = array<i64: 16, 64>}]} {
    %c0_i32 = arith.constant 0 : i32
    %0 = arith.cmpi eq, %arg2, %c0_i32 : i32
    %1 = arith.extui %0 : i1 to i32
    %c0_i32_0 = arith.constant 0 : i32
    %2 = arith.cmpi ne, %1, %c0_i32_0 : i32
    scf.if %2 {
      %cst_10 = arith.constant 0.000000e+00 : f32
      %12 = vector.broadcast %cst_10 : f32 to vector<16x64xf32>
      %c0_11 = arith.constant 0 : index
      %c0_12 = arith.constant 0 : index
      %13 = vector.load %arg7[%c0_11, %c0_12] : memref<16x64xf32, #tpu.memory_space<vmem>>, vector<16x64xf32>
      tpu.vector_store %arg7[%c0_11, %c0_12], %12 {strides = array<i32>} : memref<16x64xf32, #tpu.memory_space<vmem>>, vector<16x64xf32>,
    } else {
    }
    %c0 = arith.constant 0 : index
    %c0_1 = arith.constant 0 : index
    %3 = vector.load %arg7[%c0, %c0_1] : memref<16x64xf32, #tpu.memory_space<vmem>>, vector<16x64xf32>
    %c0_2 = arith.constant 0 : index
    %c0_3 = arith.constant 0 : index
    %4 = vector.load %arg3[%c0_2, %c0_3] : memref<16x32xbf16, #tpu.memory_space<vmem>>, vector<16x32xbf16>
    %c0_4 = arith.constant 0 : index
    %c0_5 = arith.constant 0 : index
    %5 = vector.load %arg4[%c0_4, %c0_5] : memref<32x64xbf16, #tpu.memory_space<vmem>>, vector<32x64xbf16>
    %cst = arith.constant dense<0.000000e+00> : vector<16x64xf32>
    %6 = tpu.matmul %4, %5, %cst {dimension_numbers = #tpu.dot_dimension_numbers<[1], [0], [0], [1], [0, 0, 1, 1], [], []>} : vector<16x32xbf16>, vector<32x64xbf16>, vector<16x64xf32> -> vector<16x64xf32>
    %7 = arith.addf %3, %6 : vector<16x64xf32>
    %c0_6 = arith.constant 0 : index
    %c0_7 = arith.constant 0 : index
    %8 = vector.load %arg7[%c0_6, %c0_7] : memref<16x64xf32, #tpu.memory_space<vmem>>, vector<16x64xf32>
    tpu.vector_store %arg7[%c0_6, %c0_7], %7 {strides = array<i32>} : memref<16x64xf32, #tpu.memory_space<vmem>>, vector<16x64xf32>,
    %c0_i32_8 = arith.constant 0 : i32
    %9 = arith.cmpi eq, %arg2, %c0_i32_8 : i32
    %10 = arith.extui %9 : i1 to i32
    %c0_i32_9 = arith.constant 0 : i32
    %11 = arith.cmpi ne, %10, %c0_i32_9 : i32
    scf.if %11 {
      %c0_10 = arith.constant 0 : index
      %c0_11 = arith.constant 0 : index
      %12 = vector.load %arg7[%c0_10, %c0_11] : memref<16x64xf32, #tpu.memory_space<vmem>>, vector<16x64xf32>
      %c0_12 = arith.constant 0 : index
      %c0_13 = arith.constant 0 : index
      %13 = vector.load %arg5[%c0_12, %c0_13] : memref<1x64xf32, #tpu.memory_space<vmem>>, vector<1x64xf32>
      %14 = vector.broadcast %13 : vector<1x64xf32> to vector<16x64xf32>
      %15 = arith.addf %12, %14 : vector<16x64xf32>
      %cst_14 = arith.constant 0.000000e+00 : f32
      %16 = vector.broadcast %cst_14 : f32 to vector<16x64xf32>
      %17 = arith.maximumf %15, %16 : vector<16x64xf32>
      %18 = arith.truncf %17 : vector<16x64xf32> to vector<16x64xbf16>
      %c0_15 = arith.constant 0 : index
      %c0_16 = arith.constant 0 : index
      %19 = vector.load %arg6[%c0_15, %c0_16] : memref<16x64xbf16, #tpu.memory_space<vmem>>, vector<16x64xbf16>
      tpu.vector_store %arg6[%c0_15, %c0_16], %18 {strides = array<i32>} : memref<16x64xbf16, #tpu.memory_space<vmem>>, vector<16x64xbf16>,
    } else {
    }
    return
  }
  func.func @transform_0(%arg0: i32, %arg1: i32, %arg2: i32) -> (i32, i32) {
    %c0_i32 = arith.constant 0 : i32
    return %arg0, %arg2 : i32, i32
  }
  func.func @transform_1(%arg0: i32, %arg1: i32, %arg2: i32) -> (i32, i32) {
    %c0_i32 = arith.constant 0 : i32
    return %arg2, %arg1 : i32, i32
  }
  func.func @transform_2(%arg0: i32, %arg1: i32, %arg2: i32) -> (i32, i32) {
    %c0_i32 = arith.constant 0 : i32
    %c0_i32_0 = arith.constant 0 : i32
    return %c0_i32, %arg1 : i32, i32
  }
  func.func @transform_3(%arg0: i32, %arg1: i32, %arg2: i32) -> (i32, i32) {
    %c0_i32 = arith.constant 0 : i32
    return %arg0, %arg1 : i32, i32
  }
}

module attributes {stable_mosaic.version = 11 : i64} {
  func.func @_matmul_kernel(%arg0: i32, %arg1: i32, %arg2: i32, %arg3: memref<16x64xbf16, #tpu.memory_space<vmem>>, %arg4: memref<64x32xbf16, #tpu.memory_space<vmem>>, %arg5: memref<1x32xf32, #tpu.memory_space<vmem>>, %arg6: memref<16x32xbf16, #tpu.memory_space<vmem>>, %arg7: memref<16x32xf32, #tpu.memory_space<vmem>>) attributes {dimension_semantics = [#tpu.dimension_semantics<parallel>, #tpu.dimension_semantics<parallel>, #tpu.dimension_semantics<arbitrary>], iteration_bounds = array<i64: 1, 1, 1>, scalar_prefetch = 0 : i64, scratch_operands = 1 : i64, tpu.core_type = #tpu.core_type<tc>, window_params = [{transform_indices = @transform_0, window_bounds = array<i64: 16, 64>}, {transform_indices = @transform_1, window_bounds = array<i64: 64, 32>}, {transform_indices = @transform_2, window_bounds = array<i64: 1, 32>}, {transform_indices = @transform_3, window_bounds = array<i64: 16, 32>}]} {
    %c0_i32 = arith.constant 0 : i32
    %0 = arith.cmpi eq, %arg2, %c0_i32 : i32
    %1 = arith.extui %0 : i1 to i32
    %c0_i32_0 = arith.constant 0 : i32
    %2 = arith.cmpi ne, %1, %c0_i32_0 : i32
    scf.if %2 {
      %cst_10 = arith.constant 0.000000e+00 : f32
      %12 = vector.broadcast %cst_10 : f32 to vector<16x32xf32>
      %c0_11 = arith.constant 0 : index
      %c0_12 = arith.constant 0 : index
      %13 = vector.load %arg7[%c0_11, %c0_12] : memref<16x32xf32, #tpu.memory_space<vmem>>, vector<16x32xf32>
      tpu.vector_store %arg7[%c0_11, %c0_12], %12 {strides = array<i32>} : memref<16x32xf32, #tpu.memory_space<vmem>>, vector<16x32xf32>,
    } else {
    }
    %c0 = arith.constant 0 : index
    %c0_1 = arith.constant 0 : index
    %3 = vector.load %arg7[%c0, %c0_1] : memref<16x32xf32, #tpu.memory_space<vmem>>, vector<16x32xf32>
    %c0_2 = arith.constant 0 : index
    %c0_3 = arith.constant 0 : index
    %4 = vector.load %arg3[%c0_2, %c0_3] : memref<16x64xbf16, #tpu.memory_space<vmem>>, vector<16x64xbf16>
    %c0_4 = arith.constant 0 : index
    %c0_5 = arith.constant 0 : index
    %5 = vector.load %arg4[%c0_4, %c0_5] : memref<64x32xbf16, #tpu.memory_space<vmem>>, vector<64x32xbf16>
    %cst = arith.constant dense<0.000000e+00> : vector<16x32xf32>
    %6 = tpu.matmul %4, %5, %cst {dimension_numbers = #tpu.dot_dimension_numbers<[1], [0], [0], [1], [0, 0, 1, 1], [], []>} : vector<16x64xbf16>, vector<64x32xbf16>, vector<16x32xf32> -> vector<16x32xf32>
    %7 = arith.addf %3, %6 : vector<16x32xf32>
    %c0_6 = arith.constant 0 : index
    %c0_7 = arith.constant 0 : index
    %8 = vector.load %arg7[%c0_6, %c0_7] : memref<16x32xf32, #tpu.memory_space<vmem>>, vector<16x32xf32>
    tpu.vector_store %arg7[%c0_6, %c0_7], %7 {strides = array<i32>} : memref<16x32xf32, #tpu.memory_space<vmem>>, vector<16x32xf32>,
    %c0_i32_8 = arith.constant 0 : i32
    %9 = arith.cmpi eq, %arg2, %c0_i32_8 : i32
    %10 = arith.extui %9 : i1 to i32
    %c0_i32_9 = arith.constant 0 : i32
    %11 = arith.cmpi ne, %10, %c0_i32_9 : i32
    scf.if %11 {
      %c0_10 = arith.constant 0 : index
      %c0_11 = arith.constant 0 : index
      %12 = vector.load %arg7[%c0_10, %c0_11] : memref<16x32xf32, #tpu.memory_space<vmem>>, vector<16x32xf32>
      %c0_12 = arith.constant 0 : index
      %c0_13 = arith.constant 0 : index
      %13 = vector.load %arg5[%c0_12, %c0_13] : memref<1x32xf32, #tpu.memory_space<vmem>>, vector<1x32xf32>
      %14 = vector.broadcast %13 : vector<1x32xf32> to vector<16x32xf32>
      %15 = arith.addf %12, %14 : vector<16x32xf32>
      %16 = arith.truncf %15 : vector<16x32xf32> to vector<16x32xbf16>
      %c0_14 = arith.constant 0 : index
      %c0_15 = arith.constant 0 : index
      %17 = vector.load %arg6[%c0_14, %c0_15] : memref<16x32xbf16, #tpu.memory_space<vmem>>, vector<16x32xbf16>
      tpu.vector_store %arg6[%c0_14, %c0_15], %16 {strides = array<i32>} : memref<16x32xbf16, #tpu.memory_space<vmem>>, vector<16x32xbf16>,
    } else {
    }
    return
  }
  func.func @transform_0(%arg0: i32, %arg1: i32, %arg2: i32) -> (i32, i32) {
    %c0_i32 = arith.constant 0 : i32
    return %arg0, %arg2 : i32, i32
  }
  func.func @transform_1(%arg0: i32, %arg1: i32, %arg2: i32) -> (i32, i32) {
    %c0_i32 = arith.constant 0 : i32
    return %arg2, %arg1 : i32, i32
  }
  func.func @transform_2(%arg0: i32, %arg1: i32, %arg2: i32) -> (i32, i32) {
    %c0_i32 = arith.constant 0 : i32
    %c0_i32_0 = arith.constant 0 : i32
    return %c0_i32, %arg1 : i32, i32
  }
  func.func @transform_3(%arg0: i32, %arg1: i32, %arg2: i32) -> (i32, i32) {
    %c0_i32 = arith.constant 0 : i32
    return %arg0, %arg1 : i32, i32
  }
}

module attributes {stable_mosaic.version = 11 : i64} {
  func.func @_matmul_kernel(%arg0: i32, %arg1: i32, %arg2: i32, %arg3: memref<16x32xbf16, #tpu.memory_space<vmem>>, %arg4: memref<32x64xbf16, #tpu.memory_space<vmem>>, %arg5: memref<1x64xf32, #tpu.memory_space<vmem>>, %arg6: memref<16x64xbf16, #tpu.memory_space<vmem>>, %arg7: memref<16x64xf32, #tpu.memory_space<vmem>>) attributes {dimension_semantics = [#tpu.dimension_semantics<parallel>, #tpu.dimension_semantics<parallel>, #tpu.dimension_semantics<arbitrary>], iteration_bounds = array<i64: 1, 1, 1>, scalar_prefetch = 0 : i64, scratch_operands = 1 : i64, tpu.core_type = #tpu.core_type<tc>, window_params = [{transform_indices = @transform_0, window_bounds = array<i64: 16, 32>}, {transform_indices = @transform_1, window_bounds = array<i64: 32, 64>}, {transform_indices = @transform_2, window_bounds = array<i64: 1, 64>}, {transform_indices = @transform_3, window_bounds = array<i64: 16, 64>}]} {
    %c0_i32 = arith.constant 0 : i32
    %0 = arith.cmpi eq, %arg2, %c0_i32 : i32
    %1 = arith.extui %0 : i1 to i32
    %c0_i32_0 = arith.constant 0 : i32
    %2 = arith.cmpi ne, %1, %c0_i32_0 : i32
    scf.if %2 {
      %cst_10 = arith.constant 0.000000e+00 : f32
      %12 = vector.broadcast %cst_10 : f32 to vector<16x64xf32>
      %c0_11 = arith.constant 0 : index
      %c0_12 = arith.constant 0 : index
      %13 = vector.load %arg7[%c0_11, %c0_12] : memref<16x64xf32, #tpu.memory_space<vmem>>, vector<16x64xf32>
      tpu.vector_store %arg7[%c0_11, %c0_12], %12 {strides = array<i32>} : memref<16x64xf32, #tpu.memory_space<vmem>>, vector<16x64xf32>,
    } else {
    }
    %c0 = arith.constant 0 : index
    %c0_1 = arith.constant 0 : index
    %3 = vector.load %arg7[%c0, %c0_1] : memref<16x64xf32, #tpu.memory_space<vmem>>, vector<16x64xf32>
    %c0_2 = arith.constant 0 : index
    %c0_3 = arith.constant 0 : index
    %4 = vector.load %arg3[%c0_2, %c0_3] : memref<16x32xbf16, #tpu.memory_space<vmem>>, vector<16x32xbf16>
    %c0_4 = arith.constant 0 : index
    %c0_5 = arith.constant 0 : index
    %5 = vector.load %arg4[%c0_4, %c0_5] : memref<32x64xbf16, #tpu.memory_space<vmem>>, vector<32x64xbf16>
    %cst = arith.constant dense<0.000000e+00> : vector<16x64xf32>
    %6 = tpu.matmul %4, %5, %cst {dimension_numbers = #tpu.dot_dimension_numbers<[1], [0], [0], [1], [0, 0, 1, 1], [], []>} : vector<16x32xbf16>, vector<32x64xbf16>, vector<16x64xf32> -> vector<16x64xf32>
    %7 = arith.addf %3, %6 : vector<16x64xf32>
    %c0_6 = arith.constant 0 : index
    %c0_7 = arith.constant 0 : index
    %8 = vector.load %arg7[%c0_6, %c0_7] : memref<16x64xf32, #tpu.memory_space<vmem>>, vector<16x64xf32>
    tpu.vector_store %arg7[%c0_6, %c0_7], %7 {strides = array<i32>} : memref<16x64xf32, #tpu.memory_space<vmem>>, vector<16x64xf32>,
    %c0_i32_8 = arith.constant 0 : i32
    %9 = arith.cmpi eq, %arg2, %c0_i32_8 : i32
    %10 = arith.extui %9 : i1 to i32
    %c0_i32_9 = arith.constant 0 : i32
    %11 = arith.cmpi ne, %10, %c0_i32_9 : i32
    scf.if %11 {
      %c0_10 = arith.constant 0 : index
      %c0_11 = arith.constant 0 : index
      %12 = vector.load %arg7[%c0_10, %c0_11] : memref<16x64xf32, #tpu.memory_space<vmem>>, vector<16x64xf32>
      %c0_12 = arith.constant 0 : index
      %c0_13 = arith.constant 0 : index
      %13 = vector.load %arg5[%c0_12, %c0_13] : memref<1x64xf32, #tpu.memory_space<vmem>>, vector<1x64xf32>
      %14 = vector.broadcast %13 : vector<1x64xf32> to vector<16x64xf32>
      %15 = arith.addf %12, %14 : vector<16x64xf32>
      %16 = arith.truncf %15 : vector<16x64xf32> to vector<16x64xbf16>
      %c0_14 = arith.constant 0 : index
      %c0_15 = arith.constant 0 : index
      %17 = vector.load %arg6[%c0_14, %c0_15] : memref<16x64xbf16, #tpu.memory_space<vmem>>, vector<16x64xbf16>
      tpu.vector_store %arg6[%c0_14, %c0_15], %16 {strides = array<i32>} : memref<16x64xbf16, #tpu.memory_space<vmem>>, vector<16x64xbf16>,
    } else {
    }
    return
  }
  func.func @transform_0(%arg0: i32, %arg1: i32, %arg2: i32) -> (i32, i32) {
    %c0_i32 = arith.constant 0 : i32
    return %arg0, %arg2 : i32, i32
  }
  func.func @transform_1(%arg0: i32, %arg1: i32, %arg2: i32) -> (i32, i32) {
    %c0_i32 = arith.constant 0 : i32
    return %arg2, %arg1 : i32, i32
  }
  func.func @transform_2(%arg0: i32, %arg1: i32, %arg2: i32) -> (i32, i32) {
    %c0_i32 = arith.constant 0 : i32
    %c0_i32_0 = arith.constant 0 : i32
    return %c0_i32, %arg1 : i32, i32
  }
  func.func @transform_3(%arg0: i32, %arg1: i32, %arg2: i32) -> (i32, i32) {
    %c0_i32 = arith.constant 0 : i32
    return %arg0, %arg1 : i32, i32
  }
}

module attributes {stable_mosaic.version = 11 : i64} {
  func.func @_mha_kernel(%arg0: i32, %arg1: memref<1x8x32xbf16, #tpu.memory_space<vmem>>, %arg2: memref<1x8x32xbf16, #tpu.memory_space<vmem>>, %arg3: memref<1x8x32xbf16, #tpu.memory_space<vmem>>, %arg4: memref<1x8x8xf32, #tpu.memory_space<vmem>>, %arg5: memref<1x8x32xbf16, #tpu.memory_space<vmem>>) attributes {dimension_semantics = [#tpu.dimension_semantics<parallel>], iteration_bounds = array<i64: 2>, scalar_prefetch = 0 : i64, scratch_operands = 0 : i64, tpu.core_type = #tpu.core_type<tc>, window_params = [{transform_indices = @transform_0, window_bounds = array<i64: 1, 8, 32>}, {transform_indices = @transform_1, window_bounds = array<i64: 1, 8, 32>}, {transform_indices = @transform_2, window_bounds = array<i64: 1, 8, 32>}, {transform_indices = @transform_3, window_bounds = array<i64: 1, 8, 8>}, {transform_indices = @transform_4, window_bounds = array<i64: 1, 8, 32>}]} {
    %c0 = arith.constant 0 : index
    %c0_0 = arith.constant 0 : index
    %c0_1 = arith.constant 0 : index
    %0 = vector.load %arg1[%c0, %c0_0, %c0_1] : memref<1x8x32xbf16, #tpu.memory_space<vmem>>, vector<1x8x32xbf16>
    %1 = vector.shape_cast %0 : vector<1x8x32xbf16> to vector<8x32xbf16>
    %c0_2 = arith.constant 0 : index
    %c0_3 = arith.constant 0 : index
    %c0_4 = arith.constant 0 : index
    %2 = vector.load %arg2[%c0_2, %c0_3, %c0_4] : memref<1x8x32xbf16, #tpu.memory_space<vmem>>, vector<1x8x32xbf16>
    %3 = vector.shape_cast %2 : vector<1x8x32xbf16> to vector<8x32xbf16>
    %c0_5 = arith.constant 0 : index
    %c0_6 = arith.constant 0 : index
    %c0_7 = arith.constant 0 : index
    %4 = vector.load %arg3[%c0_5, %c0_6, %c0_7] : memref<1x8x32xbf16, #tpu.memory_space<vmem>>, vector<1x8x32xbf16>
    %5 = vector.shape_cast %4 : vector<1x8x32xbf16> to vector<8x32xbf16>
    %c0_8 = arith.constant 0 : index
    %c0_9 = arith.constant 0 : index
    %c0_10 = arith.constant 0 : index
    %6 = vector.load %arg4[%c0_8, %c0_9, %c0_10] : memref<1x8x8xf32, #tpu.memory_space<vmem>>, vector<1x8x8xf32>
    %7 = vector.shape_cast %6 : vector<1x8x8xf32> to vector<8x8xf32>
    %8 = vector.extract_strided_slice %1 {offsets = [0, 0], sizes = [8, 8], strides = [1, 1]} : vector<8x32xbf16> to vector<8x8xbf16>
    %9 = arith.extf %8 : vector<8x8xbf16> to vector<8x8xf32>
    %cst = arith.constant 0.353553385 : f32
    %10 = vector.broadcast %cst : f32 to vector<8x8xf32>
    %11 = arith.mulf %9, %10 : vector<8x8xf32>
    %12 = arith.truncf %11 : vector<8x8xf32> to vector<8x8xbf16>
    %13 = vector.extract_strided_slice %3 {offsets = [0, 0], sizes = [8, 8], strides = [1, 1]} : vector<8x32xbf16> to vector<8x8xbf16>
    %14 = vector.extract_strided_slice %5 {offsets = [0, 0], sizes = [8, 8], strides = [1, 1]} : vector<8x32xbf16> to vector<8x8xbf16>
    %cst_11 = arith.constant dense<0.000000e+00> : vector<8x8xf32>
    %15 = tpu.matmul %12, %13, %cst_11 {dimension_numbers = #tpu.dot_dimension_numbers<[1], [1], [0], [0], [0, 0, 1, 0], [], []>} : vector<8x8xbf16>, vector<8x8xbf16>, vector<8x8xf32> -> vector<8x8xf32>
    %16 = arith.addf %15, %7 : vector<8x8xf32>
    %cst_12 = arith.constant dense<0xFF800000> : vector<8xf32>
    %17 = vector.multi_reduction <maximumf>, %16, %cst_12 [1] : vector<8x8xf32> to vector<8xf32>
    %18 = vector.shape_cast %17 : vector<8xf32> to vector<8x1xf32>
    %19 = vector.broadcast %18 : vector<8x1xf32> to vector<8x8xf32>
    %20 = arith.subf %16, %19 : vector<8x8xf32>
    %21 = math.exp %20 : vector<8x8xf32>
    %cst_13 = arith.constant dense<0.000000e+00> : vector<8xf32>
    %22 = vector.multi_reduction <add>, %21, %cst_13 [1] : vector<8x8xf32> to vector<8xf32>
    %23 = vector.shape_cast %22 : vector<8xf32> to vector<8x1xf32>
    %24 = tpu.reciprocal %23 {approx = true} : vector<8x1xf32> -> vector<8x1xf32>
    %25 = vector.broadcast %24 : vector<8x1xf32> to vector<8x8xf32>
    %26 = arith.mulf %21, %25 : vector<8x8xf32>
    %27 = arith.truncf %26 : vector<8x8xf32> to vector<8x8xbf16>
    %cst_14 = arith.constant dense<0.000000e+00> : vector<8x8xf32>
    %28 = tpu.matmul %27, %14, %cst_14 {dimension_numbers = #tpu.dot_dimension_numbers<[1], [0], [0], [1], [0, 0, 1, 1], [], []>} : vector<8x8xbf16>, vector<8x8xbf16>, vector<8x8xf32> -> vector<8x8xf32>
    %29 = vector.extract_strided_slice %1 {offsets = [0, 8], sizes = [8, 8], strides = [1, 1]} : vector<8x32xbf16> to vector<8x8xbf16>
    %30 = arith.extf %29 : vector<8x8xbf16> to vector<8x8xf32>
    %cst_15 = arith.constant 0.353553385 : f32
    %31 = vector.broadcast %cst_15 : f32 to vector<8x8xf32>
    %32 = arith.mulf %30, %31 : vector<8x8xf32>
    %33 = arith.truncf %32 : vector<8x8xf32> to vector<8x8xbf16>
    %34 = vector.extract_strided_slice %3 {offsets = [0, 8], sizes = [8, 8], strides = [1, 1]} : vector<8x32xbf16> to vector<8x8xbf16>
    %35 = vector.extract_strided_slice %5 {offsets = [0, 8], sizes = [8, 8], strides = [1, 1]} : vector<8x32xbf16> to vector<8x8xbf16>
    %cst_16 = arith.constant dense<0.000000e+00> : vector<8x8xf32>
    %36 = tpu.matmul %33, %34, %cst_16 {dimension_numbers = #tpu.dot_dimension_numbers<[1], [1], [0], [0], [0, 0, 1, 0], [], []>} : vector<8x8xbf16>, vector<8x8xbf16>, vector<8x8xf32> -> vector<8x8xf32>
    %37 = arith.addf %36, %7 : vector<8x8xf32>
    %cst_17 = arith.constant dense<0xFF800000> : vector<8xf32>
    %38 = vector.multi_reduction <maximumf>, %37, %cst_17 [1] : vector<8x8xf32> to vector<8xf32>
    %39 = vector.shape_cast %38 : vector<8xf32> to vector<8x1xf32>
    %40 = vector.broadcast %39 : vector<8x1xf32> to vector<8x8xf32>
    %41 = arith.subf %37, %40 : vector<8x8xf32>
    %42 = math.exp %41 : vector<8x8xf32>
    %cst_18 = arith.constant dense<0.000000e+00> : vector<8xf32>
    %43 = vector.multi_reduction <add>, %42, %cst_18 [1] : vector<8x8xf32> to vector<8xf32>
    %44 = vector.shape_cast %43 : vector<8xf32> to vector<8x1xf32>
    %45 = tpu.reciprocal %44 {approx = true} : vector<8x1xf32> -> vector<8x1xf32>
    %46 = vector.broadcast %45 : vector<8x1xf32> to vector<8x8xf32>
    %47 = arith.mulf %42, %46 : vector<8x8xf32>
    %48 = arith.truncf %47 : vector<8x8xf32> to vector<8x8xbf16>
    %cst_19 = arith.constant dense<0.000000e+00> : vector<8x8xf32>
    %49 = tpu.matmul %48, %35, %cst_19 {dimension_numbers = #tpu.dot_dimension_numbers<[1], [0], [0], [1], [0, 0, 1, 1], [], []>} : vector<8x8xbf16>, vector<8x8xbf16>, vector<8x8xf32> -> vector<8x8xf32>
    %50 = vector.extract_strided_slice %1 {offsets = [0, 16], sizes = [8, 8], strides = [1, 1]} : vector<8x32xbf16> to vector<8x8xbf16>
    %51 = arith.extf %50 : vector<8x8xbf16> to vector<8x8xf32>
    %cst_20 = arith.constant 0.353553385 : f32
    %52 = vector.broadcast %cst_20 : f32 to vector<8x8xf32>
    %53 = arith.mulf %51, %52 : vector<8x8xf32>
    %54 = arith.truncf %53 : vector<8x8xf32> to vector<8x8xbf16>
    %55 = vector.extract_strided_slice %3 {offsets = [0, 16], sizes = [8, 8], strides = [1, 1]} : vector<8x32xbf16> to vector<8x8xbf16>
    %56 = vector.extract_strided_slice %5 {offsets = [0, 16], sizes = [8, 8], strides = [1, 1]} : vector<8x32xbf16> to vector<8x8xbf16>
    %cst_21 = arith.constant dense<0.000000e+00> : vector<8x8xf32>
    %57 = tpu.matmul %54, %55, %cst_21 {dimension_numbers = #tpu.dot_dimension_numbers<[1], [1], [0], [0], [0, 0, 1, 0], [], []>} : vector<8x8xbf16>, vector<8x8xbf16>, vector<8x8xf32> -> vector<8x8xf32>
    %58 = arith.addf %57, %7 : vector<8x8xf32>
    %cst_22 = arith.constant dense<0xFF800000> : vector<8xf32>
    %59 = vector.multi_reduction <maximumf>, %58, %cst_22 [1] : vector<8x8xf32> to vector<8xf32>
    %60 = vector.shape_cast %59 : vector<8xf32> to vector<8x1xf32>
    %61 = vector.broadcast %60 : vector<8x1xf32> to vector<8x8xf32>
    %62 = arith.subf %58, %61 : vector<8x8xf32>
    %63 = math.exp %62 : vector<8x8xf32>
    %cst_23 = arith.constant dense<0.000000e+00> : vector<8xf32>
    %64 = vector.multi_reduction <add>, %63, %cst_23 [1] : vector<8x8xf32> to vector<8xf32>
    %65 = vector.shape_cast %64 : vector<8xf32> to vector<8x1xf32>
    %66 = tpu.reciprocal %65 {approx = true} : vector<8x1xf32> -> vector<8x1xf32>
    %67 = vector.broadcast %66 : vector<8x1xf32> to vector<8x8xf32>
    %68 = arith.mulf %63, %67 : vector<8x8xf32>
    %69 = arith.truncf %68 : vector<8x8xf32> to vector<8x8xbf16>
    %cst_24 = arith.constant dense<0.000000e+00> : vector<8x8xf32>
    %70 = tpu.matmul %69, %56, %cst_24 {dimension_numbers = #tpu.dot_dimension_numbers<[1], [0], [0], [1], [0, 0, 1, 1], [], []>} : vector<8x8xbf16>, vector<8x8xbf16>, vector<8x8xf32> -> vector<8x8xf32>
    %71 = vector.extract_strided_slice %1 {offsets = [0, 24], sizes = [8, 8], strides = [1, 1]} : vector<8x32xbf16> to vector<8x8xbf16>
    %72 = arith.extf %71 : vector<8x8xbf16> to vector<8x8xf32>
    %cst_25 = arith.constant 0.353553385 : f32
    %73 = vector.broadcast %cst_25 : f32 to vector<8x8xf32>
    %74 = arith.mulf %72, %73 : vector<8x8xf32>
    %75 = arith.truncf %74 : vector<8x8xf32> to vector<8x8xbf16>
    %76 = vector.extract_strided_slice %3 {offsets = [0, 24], sizes = [8, 8], strides = [1, 1]} : vector<8x32xbf16> to vector<8x8xbf16>
    %77 = vector.extract_strided_slice %5 {offsets = [0, 24], sizes = [8, 8], strides = [1, 1]} : vector<8x32xbf16> to vector<8x8xbf16>
    %cst_26 = arith.constant dense<0.000000e+00> : vector<8x8xf32>
    %78 = tpu.matmul %75, %76, %cst_26 {dimension_numbers = #tpu.dot_dimension_numbers<[1], [1], [0], [0], [0, 0, 1, 0], [], []>} : vector<8x8xbf16>, vector<8x8xbf16>, vector<8x8xf32> -> vector<8x8xf32>
    %79 = arith.addf %78, %7 : vector<8x8xf32>
    %cst_27 = arith.constant dense<0xFF800000> : vector<8xf32>
    %80 = vector.multi_reduction <maximumf>, %79, %cst_27 [1] : vector<8x8xf32> to vector<8xf32>
    %81 = vector.shape_cast %80 : vector<8xf32> to vector<8x1xf32>
    %82 = vector.broadcast %81 : vector<8x1xf32> to vector<8x8xf32>
    %83 = arith.subf %79, %82 : vector<8x8xf32>
    %84 = math.exp %83 : vector<8x8xf32>
    %cst_28 = arith.constant dense<0.000000e+00> : vector<8xf32>
    %85 = vector.multi_reduction <add>, %84, %cst_28 [1] : vector<8x8xf32> to vector<8xf32>
    %86 = vector.shape_cast %85 : vector<8xf32> to vector<8x1xf32>
    %87 = tpu.reciprocal %86 {approx = true} : vector<8x1xf32> -> vector<8x1xf32>
    %88 = vector.broadcast %87 : vector<8x1xf32> to vector<8x8xf32>
    %89 = arith.mulf %84, %88 : vector<8x8xf32>
    %90 = arith.truncf %89 : vector<8x8xf32> to vector<8x8xbf16>
    %cst_29 = arith.constant dense<0.000000e+00> : vector<8x8xf32>
    %91 = tpu.matmul %90, %77, %cst_29 {dimension_numbers = #tpu.dot_dimension_numbers<[1], [0], [0], [1], [0, 0, 1, 1], [], []>} : vector<8x8xbf16>, vector<8x8xbf16>, vector<8x8xf32> -> vector<8x8xf32>
    %92 = tpu.concatenate %28, %49, %70, %91 in 1 : vector<8x8xf32>, vector<8x8xf32>, vector<8x8xf32>, vector<8x8xf32> -> vector<8x32xf32>
    %93 = arith.truncf %92 : vector<8x32xf32> to vector<8x32xbf16>
    %c0_30 = arith.constant 0 : index
    %c0_31 = arith.constant 0 : index
    %c0_32 = arith.constant 0 : index
    %94 = vector.load %arg5[%c0_30, %c0_31, %c0_32] : memref<1x8x32xbf16, #tpu.memory_space<vmem>>, vector<1x8x32xbf16>
    %95 = vector.shape_cast %94 : vector<1x8x32xbf16> to vector<8x32xbf16>
    %96 = vector.shape_cast %93 : vector<8x32xbf16> to vector<1x8x32xbf16>
    tpu.vector_store %arg5[%c0_30, %c0_31, %c0_32], %96 {strides = array<i32>} : memref<1x8x32xbf16, #tpu.memory_space<vmem>>, vector<1x8x32xbf16>,
    return
  }
  func.func @transform_0(%arg0: i32) -> (i32, i32, i32) {
    %c0_i32 = arith.constant 0 : i32
    %c0_i32_0 = arith.constant 0 : i32
    %c0_i32_1 = arith.constant 0 : i32
    return %arg0, %c0_i32, %c0_i32_0 : i32, i32, i32
  }
  func.func @transform_1(%arg0: i32) -> (i32, i32, i32) {
    %c0_i32 = arith.constant 0 : i32
    %c0_i32_0 = arith.constant 0 : i32
    %c0_i32_1 = arith.constant 0 : i32
    return %arg0, %c0_i32, %c0_i32_0 : i32, i32, i32
  }
  func.func @transform_2(%arg0: i32) -> (i32, i32, i32) {
    %c0_i32 = arith.constant 0 : i32
    %c0_i32_0 = arith.constant 0 : i32
    %c0_i32_1 = arith.constant 0 : i32
    return %arg0, %c0_i32, %c0_i32_0 : i32, i32, i32
  }
  func.func @transform_3(%arg0: i32) -> (i32, i32, i32) {
    %c0_i32 = arith.constant 0 : i32
    %c0_i32_0 = arith.constant 0 : i32
    %c0_i32_1 = arith.constant 0 : i32
    return %arg0, %c0_i32, %c0_i32_0 : i32, i32, i32
  }
  func.func @transform_4(%arg0: i32) -> (i32, i32, i32) {
    %c0_i32 = arith.constant 0 : i32
    %c0_i32_0 = arith.constant 0 : i32
    %c0_i32_1 = arith.constant 0 : i32
    return %arg0, %c0_i32, %c0_i32_0 : i32, i32, i32
  }
}

module attributes {stable_mosaic.version = 11 : i64} {
  func.func @_matmul_kernel(%arg0: i32, %arg1: i32, %arg2: i32, %arg3: memref<16x32xbf16, #tpu.memory_space<vmem>>, %arg4: memref<32x128xbf16, #tpu.memory_space<vmem>>, %arg5: memref<1x128xf32, #tpu.memory_space<vmem>>, %arg6: memref<16x128xf32, #tpu.memory_space<vmem>>, %arg7: memref<16x128xf32, #tpu.memory_space<vmem>>) attributes {dimension_semantics = [#tpu.dimension_semantics<parallel>, #tpu.dimension_semantics<parallel>, #tpu.dimension_semantics<arbitrary>], iteration_bounds = array<i64: 1, 1, 1>, scalar_prefetch = 0 : i64, scratch_operands = 1 : i64, tpu.core_type = #tpu.core_type<tc>, window_params = [{transform_indices = @transform_0, window_bounds = array<i64: 16, 32>}, {transform_indices = @transform_1, window_bounds = array<i64: 32, 128>}, {transform_indices = @transform_2, window_bounds = array<i64: 1, 128>}, {transform_indices = @transform_3, window_bounds = array<i64: 16, 128>}]} {
    %c0_i32 = arith.constant 0 : i32
    %0 = arith.cmpi eq, %arg2, %c0_i32 : i32
    %1 = arith.extui %0 : i1 to i32
    %c0_i32_0 = arith.constant 0 : i32
    %2 = arith.cmpi ne, %1, %c0_i32_0 : i32
    scf.if %2 {
      %cst_10 = arith.constant 0.000000e+00 : f32
      %12 = vector.broadcast %cst_10 : f32 to vector<16x128xf32>
      %c0_11 = arith.constant 0 : index
      %c0_12 = arith.constant 0 : index
      %13 = vector.load %arg7[%c0_11, %c0_12] : memref<16x128xf32, #tpu.memory_space<vmem>>, vector<16x128xf32>
      tpu.vector_store %arg7[%c0_11, %c0_12], %12 {strides = array<i32>} : memref<16x128xf32, #tpu.memory_space<vmem>>, vector<16x128xf32>,
    } else {
    }
    %c0 = arith.constant 0 : index
    %c0_1 = arith.constant 0 : index
    %3 = vector.load %arg7[%c0, %c0_1] : memref<16x128xf32, #tpu.memory_space<vmem>>, vector<16x128xf32>
    %c0_2 = arith.constant 0 : index
    %c0_3 = arith.constant 0 : index
    %4 = vector.load %arg3[%c0_2, %c0_3] : memref<16x32xbf16, #tpu.memory_space<vmem>>, vector<16x32xbf16>
    %c0_4 = arith.constant 0 : index
    %c0_5 = arith.constant 0 : index
    %5 = vector.load %arg4[%c0_4, %c0_5] : memref<32x128xbf16, #tpu.memory_space<vmem>>, vector<32x128xbf16>
    %cst = arith.constant dense<0.000000e+00> : vector<16x128xf32>
    %6 = tpu.matmul %4, %5, %cst {dimension_numbers = #tpu.dot_dimension_numbers<[1], [0], [0], [1], [0, 0, 1, 1], [], []>} : vector<16x32xbf16>, vector<32x128xbf16>, vector<16x128xf32> -> vector<16x128xf32>
    %7 = arith.addf %3, %6 : vector<16x128xf32>
    %c0_6 = arith.constant 0 : index
    %c0_7 = arith.constant 0 : index
    %8 = vector.load %arg7[%c0_6, %c0_7] : memref<16x128xf32, #tpu.memory_space<vmem>>, vector<16x128xf32>
    tpu.vector_store %arg7[%c0_6, %c0_7], %7 {strides = array<i32>} : memref<16x128xf32, #tpu.memory_space<vmem>>, vector<16x128xf32>,
    %c0_i32_8 = arith.constant 0 : i32
    %9 = arith.cmpi eq, %arg2, %c0_i32_8 : i32
    %10 = arith.extui %9 : i1 to i32
    %c0_i32_9 = arith.constant 0 : i32
    %11 = arith.cmpi ne, %10, %c0_i32_9 : i32
    scf.if %11 {
      %c0_10 = arith.constant 0 : index
      %c0_11 = arith.constant 0 : index
      %12 = vector.load %arg7[%c0_10, %c0_11] : memref<16x128xf32, #tpu.memory_space<vmem>>, vector<16x128xf32>
      %c0_12 = arith.constant 0 : index
      %c0_13 = arith.constant 0 : index
      %13 = vector.load %arg5[%c0_12, %c0_13] : memref<1x128xf32, #tpu.memory_space<vmem>>, vector<1x128xf32>
      %14 = vector.broadcast %13 : vector<1x128xf32> to vector<16x128xf32>
      %15 = arith.addf %12, %14 : vector<16x128xf32>
      %c0_14 = arith.constant 0 : index
      %c0_15 = arith.constant 0 : index
      %16 = vector.load %arg6[%c0_14, %c0_15] : memref<16x128xf32, #tpu.memory_space<vmem>>, vector<16x128xf32>
      tpu.vector_store %arg6[%c0_14, %c0_15], %15 {strides = array<i32>} : memref<16x128xf32, #tpu.memory_space<vmem>>, vector<16x128xf32>,
    } else {
    }
    return
  }
  func.func @transform_0(%arg0: i32, %arg1: i32, %arg2: i32) -> (i32, i32) {
    %c0_i32 = arith.constant 0 : i32
    return %arg0, %arg2 : i32, i32
  }
  func.func @transform_1(%arg0: i32, %arg1: i32, %arg2: i32) -> (i32, i32) {
    %c0_i32 = arith.constant 0 : i32
    return %arg2, %arg1 : i32, i32
  }
  func.func @transform_2(%arg0: i32, %arg1: i32, %arg2: i32) -> (i32, i32) {
    %c0_i32 = arith.constant 0 : i32
    %c0_i32_0 = arith.constant 0 : i32
    return %c0_i32, %arg1 : i32, i32
  }
  func.func @transform_3(%arg0: i32, %arg1: i32, %arg2: i32) -> (i32, i32) {
    %c0_i32 = arith.constant 0 : i32
    return %arg0, %arg1 : i32, i32
  }
}

</mosaic_0001>

<bundles_post_ra>
// kernel: sanskrit_llm_forward.39
= control target key start
LH: loop header
LB: loop body
LE: loop exit
PB: predicated region body
PF: predicated region fallthrough
CT: control target
= control target key end

     0   :  { %vm19_vm0 = vcmask 785408   ;;  %v151_v0 = vmov 0.0   ;;  %vm152_vm1 = vmmov 0   ;;  %vm47_vm2 = vcmask 261120   ;;  %s195_s1 = inlined_call_operand.vmem [shape: bf16[32,96], index: 1, kind: input, shape index: {}]   ;;  %s196_s0 = inlined_call_operand.vmem [shape: bf16[16,32], index: 0, kind: input, shape index: {}]   ;;  %s197_s2 = inlined_call_operand.vmem [shape: f32[1,96], index: 2, kind: input, shape index: {}]   ;;  %s198_s3 = inlined_call_operand.vmem [shape: bf16[16,96], index: 3, kind: output, shape index: {}]  }
   0x1   :  { %138 = vmatprep.subr.bf16.mxu0 %v151_v0  ;;  %v148_v1 = vld [vmem:[%s195_s1] sm:$0xff]   ;;  %142 = vmatprep.mubr.msk.bf16.mxu0 %vm152_vm1, %v151_v0  ;;  %20 = vst.msk [vmem:[#allocation2] sm:$0xff] %vm19_vm0, %v151_v0  ;;  %21 = vst.msk [vmem:[#allocation2 + $0x8] sm:$0xff] %vm19_vm0, %v151_v0  ;;  %v149_v2 = vld [vmem:[%s195_s1 + $0x8] sm:$0xff]   ;;  %vm119_vm3 = vcmask 781312  }
   0x2   :  { %139 = vmatpush3.bf16.msra.mxu0 %v148_v1  ;;  %v150_v3 = vld [vmem:[%s196_s0] sm:$0xff]  }
   0x3   :  { %140 = vmatprep.subr.bf16.mxu0 %v151_v0  ;;  %v130_v12 = vld [vmem:[%s197_s2] ss:$0 sm:$0xff] }
   0x6   :  { %141 = vmatpush3.bf16.msra.mxu0 %v149_v2 }
   0x8   :  { %v22_v4 = vld [vmem:[#allocation2] sm:$0xff]  ;;  %v23_v6 = vld [vmem:[#allocation2 + $0x8] sm:$0xff] }
   0x9   :  { %143 = vmatmul.mubr.msk.bf16.vlgmr.msra.gmra.mrb[0].mxu0 %vm47_vm2, %v150_v3 }
  0xdc   :  { %v85_v5 = vpop.f32.mrb[0].mxu0 }
  0xdd   :  { %v92_v7 = vadd.f32 %v85_v5, %v22_v4  ;;  %v144_v8 = vpop.f32.mrb[1].mxu0 }
  0xde   :  { %v88_v9 = vpop.f32.mrb[2].mxu0 }
  0xdf   :  { %95 = vst.msk [vmem:[#allocation2] sm:$0xff] %vm19_vm0, %v92_v7  ;;  %v93_v10 = vadd.f32 %v88_v9, %v23_v6  ;;  %v145_v11 = vpop.f32.mrb[3].mxu0 }
  0xe1   :  { %96 = vst.msk [vmem:[#allocation2 + $0x8] sm:$0xff] %vm19_vm0, %v93_v10 }
  0xe6   :  { %v100_v13 = vld [vmem:[#allocation2] sm:$0xff] }
  0xe7   :  { %v109_v14 = vadd.f32 %v130_v12, %v100_v13 }
  0xe8   :  { %v101_v15 = vld [vmem:[#allocation2 + $0x8] sm:$0xff] }
  0xe9   :  { %v133_v16 = vpack.c.bf16 %v109_v14, %v109_v14  ;;  %v110_v17 = vadd.f32 %v130_v12, %v101_v15 }
  0xeb   :  { %120 = vst.msk [vmem:[%s198_s3] sm:$0xf] %vm119_vm3, %v133_v16  ;;  %v134_v18 = vpack.c.bf16 %v110_v17, %v110_v17 }
  0xed   :  { %121 = vst.msk [vmem:[%s198_s3 + $0x4] sm:$0xf] %vm119_vm3, %v134_v18 }

// kernel: sanskrit_llm_forward.41
= control target key start
LH: loop header
LB: loop body
LE: loop exit
PB: predicated region body
PF: predicated region fallthrough
CT: control target
= control target key end

     0   :  { %vm19_vm0 = vcmask 261120   ;;  %v150_v0 = vmov 0.0   ;;  %vm151_vm1 = vmmov 0   ;;  %vm118_vm2 = vcmask 257024   ;;  %s195_s1 = inlined_call_operand.vmem [shape: bf16[32,32], index: 1, kind: input, shape index: {}]   ;;  %s196_s0 = inlined_call_operand.vmem [shape: bf16[16,32], index: 0, kind: input, shape index: {}]   ;;  %s197_s2 = inlined_call_operand.vmem [shape: f32[1,32], index: 2, kind: input, shape index: {}]   ;;  %s198_s3 = inlined_call_operand.vmem [shape: bf16[16,32], index: 3, kind: output, shape index: {}]  }
   0x1   :  { %137 = vmatprep.subr.bf16.mxu0 %v150_v0  ;;  %v147_v1 = vld [vmem:[%s195_s1] sm:$0xff]   ;;  %141 = vmatprep.mubr.msk.bf16.mxu0 %vm151_vm1, %v150_v0  ;;  %20 = vst.msk [vmem:[#allocation2] sm:$0xff] %vm19_vm0, %v150_v0  ;;  %21 = vst.msk [vmem:[#allocation2 + $0x8] sm:$0xff] %vm19_vm0, %v150_v0  ;;  %v148_v2 = vld [vmem:[%s195_s1 + $0x8] sm:$0xff]  }
   0x2   :  { %138 = vmatpush3.bf16.msra.mxu0 %v147_v1  ;;  %v149_v3 = vld [vmem:[%s196_s0] sm:$0xff]  }
   0x3   :  { %139 = vmatprep.subr.bf16.mxu0 %v150_v0  ;;  %v129_v12 = vld [vmem:[%s197_s2] ss:$0 sm:$0xff] }
   0x6   :  { %140 = vmatpush3.bf16.msra.mxu0 %v148_v2 }
   0x8   :  { %v22_v4 = vld [vmem:[#allocation2] sm:$0xff]  ;;  %v23_v6 = vld [vmem:[#allocation2 + $0x8] sm:$0xff] }
   0x9   :  { %142 = vmatmul.mubr.msk.bf16.vlgmr.msra.gmra.mrb[0].mxu0 %vm19_vm0, %v149_v3 }
  0xdc   :  { %v85_v5 = vpop.f32.mrb[0].mxu0 }
  0xdd   :  { %v92_v7 = vadd.f32 %v85_v5, %v22_v4  ;;  %v143_v8 = vpop.f32.mrb[1].mxu0 }
  0xde   :  { %v88_v9 = vpop.f32.mrb[2].mxu0 }
  0xdf   :  { %94 = vst.msk [vmem:[#allocation2] sm:$0xff] %vm19_vm0, %v92_v7  ;;  %v93_v10 = vadd.f32 %v88_v9, %v23_v6  ;;  %v144_v11 = vpop.f32.mrb[3].mxu0 }
  0xe1   :  { %95 = vst.msk [vmem:[#allocation2 + $0x8] sm:$0xff] %vm19_vm0, %v93_v10 }
  0xe6   :  { %v99_v13 = vld [vmem:[#allocation2] sm:$0xff] }
  0xe7   :  { %v108_v14 = vadd.f32 %v129_v12, %v99_v13 }
  0xe8   :  { %v100_v15 = vld [vmem:[#allocation2 + $0x8] sm:$0xff] }
  0xe9   :  { %v132_v16 = vpack.c.bf16 %v108_v14, %v108_v14  ;;  %v109_v17 = vadd.f32 %v129_v12, %v100_v15 }
  0xeb   :  { %119 = vst.msk [vmem:[%s198_s3] sm:$0xf] %vm118_vm2, %v132_v16  ;;  %v133_v18 = vpack.c.bf16 %v109_v17, %v109_v17 }
  0xed   :  { %120 = vst.msk [vmem:[%s198_s3 + $0x4] sm:$0xf] %vm118_vm2, %v133_v18 }

// kernel: sanskrit_llm_forward.42
= control target key start
LH: loop header
LB: loop body
LE: loop exit
PB: predicated region body
PF: predicated region fallthrough
CT: control target
= control target key end

     0   :  { %vm27_vm0 = vcmask 261120   ;;  %vm81_vm1 = vcmask 257024   ;;  %s153_s0 = inlined_call_operand.vmem [shape: bf16[16,32], index: 0, kind: input, shape index: {}]   ;;  %s154_s1 = inlined_call_operand.vmem [shape: bf16[16,32], index: 1, kind: input, shape index: {}]   ;;  %s155_s2 = inlined_call_operand.vmem [shape: f32[1,32], index: 2, kind: input, shape index: {}]   ;;  %s156_s3 = inlined_call_operand.vmem [shape: f32[1,32], index: 3, kind: input, shape index: {}]   ;;  %s157_s4 = inlined_call_operand.vmem [shape: bf16[16,32], index: 4, kind: output, shape index: {}]  }
   0x1   :  { %v95_v0 = vld [vmem:[%s153_s0] sm:$0xff]  }
   0x2   :  { %v99_v1 = vld [vmem:[%s154_s1] sm:$0xff]   ;;  %v96_v2 = vunpack.c.l.bf16 %v95_v0  ;;  %v97_v4 = vunpack.c.h.bf16 %v95_v0 }
   0x3   :  { %v100_v3 = vunpack.c.l.bf16 %v99_v1  ;;  %v101_v5 = vunpack.c.h.bf16 %v99_v1  ;;  %v88_v27 = vld [vmem:[%s155_s2] ss:$0 sm:$0xff] }
   0x4   :  { %v89_v29 = vld [vmem:[%s156_s3] ss:$0 sm:$0xff] }
   0x5   :  { %v25_v6 = vadd.f32 %v100_v3, %v96_v2  ;;  %v26_v7 = vadd.f32 %v101_v5, %v97_v4 }
   0x7   :  { %v28_v8 = vsel %vm27_vm0, %v25_v6, 0.0  ;;  %v31_v9 = vsel %vm27_vm0, %v26_v7, 0.0 }
   0x8   :  { %29 = vadd.xlane.f32.xlu0 %v28_v8 }
   0xc   :  { %32 = vadd.xlane.f32.xlu0 %v31_v9 }
  0x95   :  { %v30_v10 = vpop.xlane.xlu0 %29 }
  0x96   :  { %v35_v11 = vmul.f32 0.03125, %v30_v10 }
  0x98   :  { %v37_v12 = vsub.f32 %v25_v6, %v35_v11 }
  0x99   :  { %v33_v13 = vpop.xlane.xlu0 %32 }
  0x9a   :  { %v36_v14 = vmul.f32 0.03125, %v33_v13  ;;  %v39_v15 = vmul.f32 %v37_v12, %v37_v12 }
  0x9c   :  { %v38_v16 = vsub.f32 %v26_v7, %v36_v14  ;;  %v41_v17 = vsel %vm27_vm0, %v39_v15, 0.0 }
  0x9d   :  { %42 = vadd.xlane.f32.xlu1 %v41_v17 }
  0x9e   :  { %v40_v18 = vmul.f32 %v38_v16, %v38_v16 }
  0xa0   :  { %v44_v19 = vsel %vm27_vm0, %v40_v18, 0.0 }
  0xa1   :  { %45 = vadd.xlane.f32.xlu1 %v44_v19 }
 0x12a   :  { %v43_v20 = vpop.xlane.xlu1 %42 }
 0x12b   :  { %v47_v21 = vmul.f32 0.03125, %v43_v20 }
 0x12d   :  { %v49_v22 = vadd.f32 1e-05, %v47_v21 }
 0x12e   :  { %v46_v23 = vpop.xlane.xlu1 %45 }
 0x12f   :  { %102 = vrsqrt.f32 %v49_v22  ;;  %v48_v24 = vmul.f32 0.03125, %v46_v23 }
 0x131   :  { %v50_v25 = vadd.f32 1e-05, %v48_v24 }
 0x133   :  { %104 = vrsqrt.f32 %v50_v25 }
 0x139   :  { %v103_v26 = vpop.eup %102 }
 0x13a   :  { %v53_v28 = vmul.f32 %v103_v26, %v37_v12 }
 0x13c   :  { %v62_v30 = vmul.f32 %v88_v27, %v53_v28 }
 0x13d   :  { %v105_v31 = vpop.eup %104 }
 0x13e   :  { %v71_v32 = vadd.f32 %v89_v29, %v62_v30  ;;  %v54_v33 = vmul.f32 %v105_v31, %v38_v16 }
 0x140   :  { %v92_v34 = vpack.c.bf16 %v71_v32, %v71_v32  ;;  %v63_v35 = vmul.f32 %v88_v27, %v54_v33 }
 0x142   :  { %82 = vst.msk [vmem:[%s157_s4] sm:$0xf] %vm81_vm1, %v92_v34  ;;  %v72_v36 = vadd.f32 %v89_v29, %v63_v35 }
 0x144   :  { %v93_v37 = vpack.c.bf16 %v72_v36, %v72_v36 }
 0x146   :  { %83 = vst.msk [vmem:[%s157_s4 + $0x4] sm:$0xf] %vm81_vm1, %v93_v37 }

// kernel: sanskrit_llm_forward.40
= control target key start
LH: loop header
LB: loop body
LE: loop exit
PB: predicated region body
PF: predicated region fallthrough
CT: control target
= control target key end

     0   :  { %s965_s15 = smov 0   ;;  %s1069_s0 = inlined_call_operand.vmem [shape: bf16[2,8,32], index: 0, kind: input, shape index: {}]   ;;  %s1070_s1 = inlined_call_operand.vmem [shape: bf16[2,8,32], index: 1, kind: input, shape index: {}]   ;;  %s1071_s2 = inlined_call_operand.vmem [shape: bf16[2,8,32], index: 2, kind: input, shape index: {}]   ;;  %s1072_s3 = inlined_call_operand.vmem [shape: f32[2,1,8], index: 3, kind: input, shape index: {}]   ;;  %s1073_s4 = inlined_call_operand.vmem [shape: bf16[2,8,32], index: 4, kind: output, shape index: {}]  }
   0x1 LB: > { %s804_s16 = sadd.s32 4294967295, %s930_s15   ;;  %p808_p0 = scmp.ge.s32.totalorder %s930_s15, 1  ;;  %s930_s15 = sphi %s965_s15, %s14_s15  }
   0x2   : > { %p187_p1 = scmp.lt.s32.totalorder %s930_s15, 3 }
   0x4   : > { %p188_p2 = pnand %p808_p0, %p187_p1 }
   0x5   : > { %p222_p3 = scmp.lt.s32.totalorder (!%p188_p2), %s804_s16, 1  ;;  %v932_v0 = vmov (!%p188_p2), 0.0   ;;  %vm933_vm0 = vmmov (!%p188_p2), 0   ;;  %vm255_vm1 = vcmask (!%p188_p2), 64512   ;;  %s934_s27 = smov (!%p188_p2), 120   ;;  %vm317_vm2 = vcmask (!%p188_p2), 1043456  }
   0x6   : > { %191 = sbr.rel (%p188_p2) target bundleno = 1477 (0x5c5), region = 36  ;;  %842 = vmatprep.subr.bf16.mxu0 (!%p188_p2), %v932_v0  ;;  %844 = vmatprep.mubr.msk.bf16.mxu0 (!%p188_p2), %vm933_vm0, %v932_v0  ;;  %s935_s28 = smov (!%p188_p2), 112   ;;  %vm711_vm3 = vcmask (!%p188_p2), 130048   ;;  %vm713_vm4 = vcmask (!%p188_p2), 195584   ;;  %vm716_vm5 = vcmask (!%p188_p2), 257024  }
   0x7   : > { %848 = vmatprep.subr.bf16.mxu1 (!%p188_p2), %v932_v0  ;;  %850 = vmatprep.mubr.msk.bf16.mxu1 (!%p188_p2), %vm933_vm0, %v932_v0  ;;  %s936_s29 = smov (!%p188_p2), 104   ;;  %s937_s7 = smov (!%p188_p2), 8  }
   0x8   : > { %s938_s8 = smov (!%p188_p2), 16   ;;  %s939_s9 = smov (!%p188_p2), 24  }
   0xd   : > { %s1075_s16 = smov (!%p222_p3, %s804_s16), 1 }
   0xe   : > { %s979_s17 = sshll.u32 %s1075_s16, 2  ;;  %s236_s26 = scalar_lea.vmem %s1072_s3, %s1075_s16 }
   0xf   : > { %s229_s20 = scalar_lea.vmem %s1070_s1, %s979_s17  ;;  %s225_s23 = scalar_lea.vmem %s1069_s0, %s979_s17  ;;  %v997_v7 = vld [vmem:[%s236_s26] ss:$0 sm:$0xff] }
  0x10   : > { %v243_v1 = vld [vmem:[%s229_s20] sm:$0xf]  ;;  %s233_s6 = scalar_lea.vmem %s1071_s2, %s979_s17  ;;  %s240_s12 = scalar_lea.vmem %s1073_s4, %s979_s17 }
  0x11   : > { %v242_v2 = vld [vmem:[%s225_s23] sm:$0xf]  ;;  %v260_v3 = vsel %vm255_vm1, %v243_v1, 0  ;;  %v816_v14 = vcombine.low %v243_v1, %v243_v1 }
  0x12   : > { %v246_v4 = vunpack.c.l.bf16 %v242_v2  ;;  %843 = vmatpush3.bf16.xpose.msra.mxu0 %v260_v3  ;;  %v1011_v20 = vld [vmem:[%s233_s6] sm:$0xf] }
  0x13   : > { %860 = vmatprep.subr.bf16.mxu0 %v932_v0  ;;  %367 = vrot.lane.b32.xlu1 %v816_v14, %s934_s27  ;;  %v319_v21 = vsel %vm317_vm2, %v1011_v20, 0 }
  0x14   : > { %v247_v5 = vmul.f32 0.35355338, %v246_v4  ;;  %849 = vmatpush3.bf16.msra.mxu1 %v319_v21  ;;  %v818_v4 = vcombine.low %v1011_v20, %v1011_v20 }
  0x15   : > { %854 = vmatprep.subr.bf16.mxu1 %v932_v0 }
  0x16   : > { %v248_v6 = vpack.c.bf16 %v247_v5, %v247_v5 }
  0x18   : > { %362 = vrot.lane.b32.xlu1 %v248_v6, %s934_s27 }
  0x19   : > { %845 = vmatmul.mubr.msk.bf16.vlgmr.msra.gmra.mrb[0].mxu0 %vm255_vm1, %v248_v6 }
  0x1a   : > { %862 = vmatprep.mubr.msk.bf16.mxu0 %vm933_vm0, %v932_v0 }
  0x1c   : > { %478 = vrot.lane.b32.xlu1 %v248_v6, %s935_s28 }
  0x20   : > { %590 = vrot.lane.b32.xlu1 %v816_v14, %s936_s29 }
  0x24   : > { %588 = vrot.lane.b32.xlu1 %v248_v6, %s936_s29 }
  0x85   : > { %v368_v24 = vpop.permute.xlu1 %367 }
  0x86   : > { %v373_v26 = vsel %vm255_vm1, %v368_v24, 0 }
  0x8a   : > { %v363_v28 = vpop.permute.xlu1 %362 }
  0x8e   : > { %v479_v30 = vpop.permute.xlu1 %478 }
  0x92   : > { %v591_v32 = vpop.permute.xlu1 %590 }
  0x93   : > { %v596_v33 = vsel %vm255_vm1, %v591_v32, 0 }
  0x96   : > { %v589_v34 = vpop.permute.xlu1 %588 }
  0xec   : > { %v296_v8 = vpop.f32.mrb[0].mxu0 }
  0xed   : > { %v297_v9 = vadd.f32 %v997_v7, %v296_v8  ;;  %v846_v10 = vpop.f32.mrb[1].mxu0 }
  0xee   : > { %v299_v11 = vpop.f32.mrb[2].mxu0 }
  0xef   : > { %v847_v12 = vpop.f32.mrb[3].mxu0  ;;  %v302_v13 = vsel %vm255_vm1, %v297_v9, -inf }
  0xf0   : > { %303 = vmax.xlane.f32.xlu0 %v302_v13 }
 0x17d   : > { %v304_v15 = vpop.xlane.xlu0 %303 }
 0x17e   : > { %v305_v16 = vsub.f32 %v297_v9, %v304_v15 }
 0x180   : > { %v306_v17 = vmul.f32 1.442695, %v305_v16 }
 0x182   : > { %908 = vpow2.f32 %v306_v17 }
 0x18c   : > { %v909_v18 = vpop.eup %908 }
 0x18d   : > { %v308_v19 = vsel %vm255_vm1, %v909_v18, 0.0 }
 0x18e   : > { %309 = vadd.xlane.f32.xlu0 %v308_v19 }
 0x1a4   : > { %480 = vrot.lane.b32.xlu0 %v816_v14, %s935_s28 }
 0x21b   : > { %v310_v22 = vpop.xlane.xlu0 %309 }
 0x21c   : > { %910 = vrcp.f32 %v310_v22 }
 0x21f   : > { %v481_v29 = vpop.permute.xlu0 %480 }
 0x220   : > { %v486_v31 = vsel %vm255_vm1, %v481_v29, 0 }
 0x226   : > { %v911_v23 = vpop.eup %910 }
 0x227   : > { %v312_v25 = vmul.f32 %v911_v23, %v909_v18 }
 0x229   : > { %v313_v27 = vpack.c.bf16 %v312_v25, %v312_v25 }
 0x22b   : > { %851 = vmatmul.mubr.msk.bf16.vlgmr.msra.gmra.mrb[0].mxu1 %vm255_vm1, %v313_v27 }
 0x22c   : > { %855 = vmatpush3.bf16.xpose.msra.mxu1 %v373_v26  ;;  %856 = vmatprep.mubr.msk.bf16.mxu1 %vm933_vm0, %v932_v0 }
 0x22d   : > { %866 = vmatprep.subr.bf16.mxu1 %v932_v0 }
 0x233   : > { %857 = vmatmul.mubr.msk.bf16.vlgmr.msra.gmra.mrb[4].mxu1 %vm255_vm1, %v363_v28 }
 0x234   : > { %867 = vmatpush3.bf16.xpose.msra.mxu1 %v486_v31  ;;  %868 = vmatprep.mubr.msk.bf16.mxu1 %vm933_vm0, %v932_v0 }
 0x235   : > { %878 = vmatprep.subr.bf16.mxu1 %v932_v0 }
 0x23b   : > { %869 = vmatmul.mubr.msk.bf16.vlgmr.msra.gmra.mrb[8].mxu1 %vm255_vm1, %v479_v30 }
 0x23c   : > { %879 = vmatpush3.bf16.xpose.msra.mxu1 %v596_v33  ;;  %880 = vmatprep.mubr.msk.bf16.mxu1 %vm933_vm0, %v932_v0 }
 0x243   : > { %881 = vmatmul.mubr.msk.bf16.vlgmr.msra.gmra.mrb[12].mxu1 %vm255_vm1, %v589_v34 }
 0x2fe   : > { %v1032_v35 = vpop.f32.mrb[0].mxu1 }
 0x2ff   : > { %v852_v36 = vpop.f32.mrb[1].mxu1 }
 0x300   : > { %v358_v37 = vpop.f32.mrb[2].mxu1 }
 0x301   : > { %v853_v38 = vpop.f32.mrb[3].mxu1 }
 0x306   : > { %v409_v39 = vpop.f32.mrb[4].mxu1 }
 0x307   : > { %v410_v40 = vadd.f32 %v997_v7, %v409_v39  ;;  %v858_v41 = vpop.f32.mrb[5].mxu1 }
 0x308   : > { %v412_v42 = vpop.f32.mrb[6].mxu1 }
 0x309   : > { %v859_v43 = vpop.f32.mrb[7].mxu1  ;;  %v415_v44 = vsel %vm255_vm1, %v410_v40, -inf }
 0x30a   : > { %416 = vmax.xlane.f32.xlu1 %v415_v44 }
 0x30e   : > { %v522_v45 = vpop.f32.mrb[8].mxu1 }
 0x30f   : > { %v523_v46 = vadd.f32 %v997_v7, %v522_v45  ;;  %v870_v47 = vpop.f32.mrb[9].mxu1 }
 0x310   : > { %v525_v48 = vpop.f32.mrb[10].mxu1 }
 0x311   : > { %v528_v49 = vsel %vm255_vm1, %v523_v46, -inf  ;;  %v871_v50 = vpop.f32.mrb[11].mxu1 }
 0x312   : > { %529 = vmax.xlane.f32.xlu0 %v528_v49 }
 0x316   : > { %v632_v51 = vpop.f32.mrb[12].mxu1 }
 0x317   : > { %v633_v52 = vadd.f32 %v997_v7, %v632_v51  ;;  %v882_v53 = vpop.f32.mrb[13].mxu1 }
 0x318   : > { %v635_v54 = vpop.f32.mrb[14].mxu1 }
 0x319   : > { %v638_v55 = vsel %vm255_vm1, %v633_v52, -inf  ;;  %v883_v56 = vpop.f32.mrb[15].mxu1 }
 0x31a   : > { %639 = vmax.xlane.f32.xlu1 %v638_v55 }
 0x397   : > { %v417_v57 = vpop.xlane.xlu1 %416 }
 0x398   : > { %v418_v58 = vsub.f32 %v410_v40, %v417_v57 }
 0x39a   : > { %v419_v59 = vmul.f32 1.442695, %v418_v58 }
 0x39c   : > { %912 = vpow2.f32 %v419_v59 }
 0x39f   : > { %v530_v60 = vpop.xlane.xlu0 %529 }
 0x3a0   : > { %v531_v61 = vsub.f32 %v523_v46, %v530_v60 }
 0x3a2   : > { %v532_v62 = vmul.f32 1.442695, %v531_v61 }
 0x3a4   : > { %914 = vpow2.f32 %v532_v62 }
 0x3a6   : > { %v913_v63 = vpop.eup %912 }
 0x3a7   : > { %v421_v1 = vsel %vm255_vm1, %v913_v63, 0.0  ;;  %v640_v5 = vpop.xlane.xlu1 %639 }
 0x3a8   : > { %422 = vadd.xlane.f32.xlu1 %v421_v1  ;;  %v641_v6 = vsub.f32 %v633_v52, %v640_v5 }
 0x3aa   : > { %v642_v7 = vmul.f32 1.442695, %v641_v6 }
 0x3ac   : > { %916 = vpow2.f32 %v642_v7 }
 0x3ae   : > { %v915_v2 = vpop.eup %914 }
 0x3af   : > { %v534_v3 = vsel %vm255_vm1, %v915_v2, 0.0 }
 0x3b0   : > { %535 = vadd.xlane.f32.xlu0 %v534_v3 }
 0x3b6   : > { %v917_v8 = vpop.eup %916 }
 0x3b7   : > { %v644_v9 = vsel %vm255_vm1, %v917_v8, 0.0 }
 0x3b9   : > { %540 = vrot.lane.b32.xlu1 %v818_v4, %s935_s28 }
 0x3c6   : > { %430 = vrot.lane.b32.xlu0 %v818_v4, %s934_s27 }
 0x3dd   : > { %645 = vadd.xlane.f32.xlu1 %v644_v9 }
 0x3ee   : > { %650 = vrot.lane.b32.xlu1 %v818_v4, %s936_s29 }
 0x435   : > { %v423_v10 = vpop.xlane.xlu1 %422 }
 0x436   : > { %918 = vrcp.f32 %v423_v10 }
 0x439   : > { %v541_v16 = vpop.permute.xlu1 %540 }
 0x43a   : > { %v546_v18 = vsel %vm317_vm2, %v541_v16, 0 }
 0x43d   : > { %v536_v11 = vpop.xlane.xlu0 %535 }
 0x43e   : > { %920 = vrcp.f32 %v536_v11 }
 0x440   : > { %v919_v12 = vpop.eup %918 }
 0x441   : > { %v425_v13 = vmul.f32 %v919_v12, %v913_v63  ;;  %v431_v14 = vpop.permute.xlu0 %430 }
 0x442   : > { %v436_v15 = vsel %vm317_vm2, %v431_v14, 0 }
 0x443   : > { %861 = vmatpush3.bf16.msra.mxu0 %v436_v15  ;;  %v426_v17 = vpack.c.bf16 %v425_v13, %v425_v13 }
 0x444   : > { %872 = vmatprep.subr.bf16.mxu0 %v932_v0 }
 0x446   : > { %863 = vmatmul.mubr.msk.bf16.vlgmr.msra.gmra.mrb[4].mxu0 %vm255_vm1, %v426_v17 }
 0x447   : > { %873 = vmatpush3.bf16.msra.mxu0 %v546_v18  ;;  %874 = vmatprep.mubr.msk.bf16.mxu0 %vm933_vm0, %v932_v0 }
 0x448   : > { %v921_v19 = vpop.eup %920  ;;  %884 = vmatprep.subr.bf16.mxu0 %v932_v0 }
 0x449   : > { %v538_v20 = vmul.f32 %v921_v19, %v915_v2 }
 0x44b   : > { %v539_v21 = vpack.c.bf16 %v538_v20, %v538_v20 }
 0x44e   : > { %875 = vmatmul.mubr.msk.bf16.vlgmr.msra.gmra.mrb[8].mxu0 %vm255_vm1, %v539_v21 }
 0x44f   : > { %886 = vmatprep.mubr.msk.bf16.mxu0 %vm933_vm0, %v932_v0 }
 0x46a   : > { %v646_v22 = vpop.xlane.xlu1 %645 }
 0x46b   : > { %922 = vrcp.f32 %v646_v22 }
 0x46e   : > { %v651_v23 = vpop.permute.xlu1 %650 }
 0x46f   : > { %v656_v24 = vsel %vm317_vm2, %v651_v23, 0 }
 0x470   : > { %885 = vmatpush3.bf16.msra.mxu0 %v656_v24 }
 0x475   : > { %v923_v25 = vpop.eup %922 }
 0x476   : > { %v648_v26 = vmul.f32 %v923_v25, %v917_v8 }
 0x478   : > { %v649_v27 = vpack.c.bf16 %v648_v26, %v648_v26 }
 0x47a   : > { %887 = vmatmul.mubr.msk.bf16.vlgmr.msra.gmra.mrb[12].mxu0 %vm255_vm1, %v649_v27 }
 0x519   : > { %v472_v28 = vpop.f32.mrb[4].mxu0 }
 0x51a   : > { %699 = vrot.lane.b32.xlu0 %v472_v28, %s937_s7  ;;  %v864_v29 = vpop.f32.mrb[5].mxu0 }
 0x51b   : > { %v475_v30 = vpop.f32.mrb[6].mxu0 }
 0x51c   : > { %v865_v31 = vpop.f32.mrb[7].mxu0 }
 0x521   : > { %v582_v32 = vpop.f32.mrb[8].mxu0 }
 0x522   : > { %703 = vrot.lane.b32.xlu1 %v582_v32, %s938_s8  ;;  %v876_v0 = vpop.f32.mrb[9].mxu0 }
 0x523   : > { %v585_v33 = vpop.f32.mrb[10].mxu0 }
 0x524   : > { %v877_v34 = vpop.f32.mrb[11].mxu0 }
 0x54d   : > { %v692_v36 = vpop.f32.mrb[12].mxu0 }
 0x54e   : > { %707 = vrot.lane.b32.xlu0 %v692_v36, %s939_s9  ;;  %v888_v37 = vpop.f32.mrb[13].mxu0 }
 0x54f   : > { %v695_v38 = vpop.f32.mrb[14].mxu0 }
 0x550   : > { %v889_v39 = vpop.f32.mrb[15].mxu0 }
 0x58c   : > { %v700_v40 = vpop.permute.xlu0 %699 }
 0x58d   : > { %v710_v42 = vsel %vm255_vm1, %v1032_v35, %v700_v40 }
 0x594   : > { %v704_v41 = vpop.permute.xlu1 %703 }
 0x595   : > { %v712_v43 = vsel %vm711_vm3, %v710_v42, %v704_v41 }
 0x5c0   : > { %v708_v44 = vpop.permute.xlu0 %707 }
 0x5c1   : > { %v714_v45 = vsel %vm713_vm4, %v712_v43, %v708_v44 }
 0x5c2   : > { %v715_v46 = vpack.c.bf16 %v714_v45, %v714_v45 }
 0x5c4   : > { %717 = vst.msk [vmem:[%s240_s12] sm:$0xf] %vm716_vm5, %v715_v46 }
 0x5c5 PF: > { %s14_s15 = sadd.s32 1, %s930_s15  }
 0x5c6   : > { %p11_p4 = scmp.ge.s32.totalorder %s14_s15, 4  }
 0x5c8   :  { %13 = sbr.rel (!%p11_p4) target bundleno = 1 (0x1), region = 75 }

// kernel: sanskrit_llm_forward.43
= control target key start
LH: loop header
LB: loop body
LE: loop exit
PB: predicated region body
PF: predicated region fallthrough
CT: control target
= control target key end

     0   :  { %vm19_vm0 = vcmask 523264   ;;  %v153_v0 = vmov 0.0   ;;  %vm154_vm1 = vmmov 0   ;;  %vm47_vm2 = vcmask 261120   ;;  %s197_s1 = inlined_call_operand.vmem [shape: bf16[32,64], index: 1, kind: input, shape index: {}]   ;;  %s198_s0 = inlined_call_operand.vmem [shape: bf16[16,32], index: 0, kind: input, shape index: {}]   ;;  %s199_s2 = inlined_call_operand.vmem [shape: f32[1,64], index: 2, kind: input, shape index: {}]   ;;  %s200_s3 = inlined_call_operand.vmem [shape: bf16[16,64], index: 3, kind: output, shape index: {}]  }
   0x1   :  { %140 = vmatprep.subr.bf16.mxu0 %v153_v0  ;;  %v150_v1 = vld [vmem:[%s197_s1] sm:$0xff]   ;;  %144 = vmatprep.mubr.msk.bf16.mxu0 %vm154_vm1, %v153_v0  ;;  %20 = vst.msk [vmem:[#allocation2] sm:$0xff] %vm19_vm0, %v153_v0  ;;  %21 = vst.msk [vmem:[#allocation2 + $0x8] sm:$0xff] %vm19_vm0, %v153_v0  ;;  %v151_v2 = vld [vmem:[%s197_s1 + $0x8] sm:$0xff]   ;;  %vm121_vm3 = vcmask 519168  }
   0x2   :  { %141 = vmatpush3.bf16.msra.mxu0 %v150_v1  ;;  %v152_v3 = vld [vmem:[%s198_s0] sm:$0xff]  }
   0x3   :  { %142 = vmatprep.subr.bf16.mxu0 %v153_v0  ;;  %v132_v12 = vld [vmem:[%s199_s2] ss:$0 sm:$0xff] }
   0x6   :  { %143 = vmatpush3.bf16.msra.mxu0 %v151_v2 }
   0x8   :  { %v22_v4 = vld [vmem:[#allocation2] sm:$0xff]  ;;  %v23_v6 = vld [vmem:[#allocation2 + $0x8] sm:$0xff] }
   0x9   :  { %145 = vmatmul.mubr.msk.bf16.vlgmr.msra.gmra.mrb[0].mxu0 %vm47_vm2, %v152_v3 }
  0xdc   :  { %v85_v5 = vpop.f32.mrb[0].mxu0 }
  0xdd   :  { %v92_v7 = vadd.f32 %v85_v5, %v22_v4  ;;  %v146_v8 = vpop.f32.mrb[1].mxu0 }
  0xde   :  { %v88_v9 = vpop.f32.mrb[2].mxu0 }
  0xdf   :  { %95 = vst.msk [vmem:[#allocation2] sm:$0xff] %vm19_vm0, %v92_v7  ;;  %v93_v10 = vadd.f32 %v88_v9, %v23_v6  ;;  %v147_v11 = vpop.f32.mrb[3].mxu0 }
  0xe1   :  { %96 = vst.msk [vmem:[#allocation2 + $0x8] sm:$0xff] %vm19_vm0, %v93_v10 }
  0xe6   :  { %v100_v13 = vld [vmem:[#allocation2] sm:$0xff] }
  0xe7   :  { %v109_v14 = vadd.f32 %v132_v12, %v100_v13 }
  0xe8   :  { %v101_v15 = vld [vmem:[#allocation2 + $0x8] sm:$0xff] }
  0xe9   :  { %v111_v16 = vmax.f32 %v109_v14, 0.0  ;;  %v110_v17 = vadd.f32 %v132_v12, %v101_v15 }
  0xeb   :  { %v135_v18 = vpack.c.bf16 %v111_v16, %v111_v16  ;;  %v112_v19 = vmax.f32 %v110_v17, 0.0 }
  0xed   :  { %122 = vst.msk [vmem:[%s200_s3] sm:$0xf] %vm121_vm3, %v135_v18  ;;  %v136_v20 = vpack.c.bf16 %v112_v19, %v112_v19 }
  0xef   :  { %123 = vst.msk [vmem:[%s200_s3 + $0x4] sm:$0xf] %vm121_vm3, %v136_v20 }

// kernel: sanskrit_llm_forward.44
= control target key start
LH: loop header
LB: loop body
LE: loop exit
PB: predicated region body
PF: predicated region fallthrough
CT: control target
= control target key end

     0   :  { %vm19_vm0 = vcmask 261120   ;;  %v177_v0 = vmov 0.0   ;;  %vm178_vm1 = vmmov 0   ;;  %vm63_vm2 = vcmask 523264   ;;  %s227_s1 = inlined_call_operand.vmem [shape: bf16[64,32], index: 1, kind: input, shape index: {}]   ;;  %s228_s0 = inlined_call_operand.vmem [shape: bf16[16,64], index: 0, kind: input, shape index: {}]   ;;  %s229_s2 = inlined_call_operand.vmem [shape: f32[1,32], index: 2, kind: input, shape index: {}]   ;;  %s230_s3 = inlined_call_operand.vmem [shape: bf16[16,32], index: 3, kind: output, shape index: {}]  }
   0x1   :  { %158 = vmatprep.subr.bf16.mxu0 %v177_v0  ;;  %v172_v1 = vld [vmem:[%s227_s1] sm:$0xff]   ;;  %166 = vmatprep.mubr.msk.bf16.mxu0 %vm178_vm1, %v177_v0  ;;  %20 = vst.msk [vmem:[#allocation2] sm:$0xff] %vm19_vm0, %v177_v0  ;;  %21 = vst.msk [vmem:[#allocation2 + $0x8] sm:$0xff] %vm19_vm0, %v177_v0  ;;  %v173_v2 = vld [vmem:[%s227_s1 + $0x8] sm:$0xff]   ;;  %vm135_vm3 = vcmask 257024  }
   0x2   :  { %159 = vmatpush3.bf16.msra.mxu0 %v172_v1  ;;  %v174_v3 = vld [vmem:[%s227_s1 + $0x10] sm:$0xff]   ;;  %v175_v4 = vld [vmem:[%s227_s1 + $0x18] sm:$0xff]   ;;  %v176_v5 = vld [vmem:[%s228_s0] sm:$0xff]  }
   0x3   :  { %160 = vmatprep.subr.bf16.mxu0 %v177_v0  ;;  %v148_v14 = vld [vmem:[%s229_s2] ss:$0 sm:$0xff] }
   0x6   :  { %161 = vmatpush3.bf16.msra.mxu0 %v173_v2 }
   0x7   :  { %162 = vmatprep.subr.bf16.mxu0 %v177_v0 }
   0x8   :  { %v22_v6 = vld [vmem:[#allocation2] sm:$0xff]  ;;  %v23_v8 = vld [vmem:[#allocation2 + $0x8] sm:$0xff] }
   0xa   :  { %163 = vmatpush3.bf16.msra.mxu0 %v174_v3 }
   0xb   :  { %164 = vmatprep.subr.bf16.mxu0 %v177_v0 }
   0xe   :  { %165 = vmatpush3.bf16.msra.mxu0 %v175_v4 }
  0x11   :  { %167 = vmatmul.mubr.msk.bf16.vlgmr.msra.gmra.mrb[0].mxu0 %vm63_vm2, %v176_v5 }
  0xe4   :  { %v101_v7 = vpop.f32.mrb[0].mxu0 }
  0xe5   :  { %v108_v9 = vadd.f32 %v101_v7, %v22_v6  ;;  %v168_v10 = vpop.f32.mrb[1].mxu0 }
  0xe6   :  { %v104_v11 = vpop.f32.mrb[2].mxu0 }
  0xe7   :  { %111 = vst.msk [vmem:[#allocation2] sm:$0xff] %vm19_vm0, %v108_v9  ;;  %v109_v12 = vadd.f32 %v104_v11, %v23_v8  ;;  %v169_v13 = vpop.f32.mrb[3].mxu0 }
  0xe9   :  { %112 = vst.msk [vmem:[#allocation2 + $0x8] sm:$0xff] %vm19_vm0, %v109_v12 }
  0xee   :  { %v116_v15 = vld [vmem:[#allocation2] sm:$0xff] }
  0xef   :  { %v125_v16 = vadd.f32 %v148_v14, %v116_v15 }
  0xf0   :  { %v117_v17 = vld [vmem:[#allocation2 + $0x8] sm:$0xff] }
  0xf1   :  { %v151_v18 = vpack.c.bf16 %v125_v16, %v125_v16  ;;  %v126_v19 = vadd.f32 %v148_v14, %v117_v17 }
  0xf3   :  { %136 = vst.msk [vmem:[%s230_s3] sm:$0xf] %vm135_vm3, %v151_v18  ;;  %v152_v20 = vpack.c.bf16 %v126_v19, %v126_v19 }
  0xf5   :  { %137 = vst.msk [vmem:[%s230_s3 + $0x4] sm:$0xf] %vm135_vm3, %v152_v20 }

// kernel: sanskrit_llm_forward.58
= control target key start
LH: loop header
LB: loop body
LE: loop exit
PB: predicated region body
PF: predicated region fallthrough
CT: control target
= control target key end

     0   :  { %vm19_vm0 = vcmask 523264   ;;  %v151_v0 = vmov 0.0   ;;  %vm152_vm1 = vmmov 0   ;;  %vm47_vm2 = vcmask 261120   ;;  %s195_s1 = inlined_call_operand.vmem [shape: bf16[32,64], index: 1, kind: input, shape index: {}]   ;;  %s196_s0 = inlined_call_operand.vmem [shape: bf16[16,32], index: 0, kind: input, shape index: {}]   ;;  %s197_s2 = inlined_call_operand.vmem [shape: f32[1,64], index: 2, kind: input, shape index: {}]   ;;  %s198_s3 = inlined_call_operand.vmem [shape: bf16[16,64], index: 3, kind: output, shape index: {}]  }
   0x1   :  { %138 = vmatprep.subr.bf16.mxu0 %v151_v0  ;;  %v148_v1 = vld [vmem:[%s195_s1] sm:$0xff]   ;;  %142 = vmatprep.mubr.msk.bf16.mxu0 %vm152_vm1, %v151_v0  ;;  %20 = vst.msk [vmem:[#allocation2] sm:$0xff] %vm19_vm0, %v151_v0  ;;  %21 = vst.msk [vmem:[#allocation2 + $0x8] sm:$0xff] %vm19_vm0, %v151_v0  ;;  %v149_v2 = vld [vmem:[%s195_s1 + $0x8] sm:$0xff]   ;;  %vm119_vm3 = vcmask 519168  }
   0x2   :  { %139 = vmatpush3.bf16.msra.mxu0 %v148_v1  ;;  %v150_v3 = vld [vmem:[%s196_s0] sm:$0xff]  }
   0x3   :  { %140 = vmatprep.subr.bf16.mxu0 %v151_v0  ;;  %v130_v12 = vld [vmem:[%s197_s2] ss:$0 sm:$0xff] }
   0x6   :  { %141 = vmatpush3.bf16.msra.mxu0 %v149_v2 }
   0x8   :  { %v22_v4 = vld [vmem:[#allocation2] sm:$0xff]  ;;  %v23_v6 = vld [vmem:[#allocation2 + $0x8] sm:$0xff] }
   0x9   :  { %143 = vmatmul.mubr.msk.bf16.vlgmr.msra.gmra.mrb[0].mxu0 %vm47_vm2, %v150_v3 }
  0xdc   :  { %v85_v5 = vpop.f32.mrb[0].mxu0 }
  0xdd   :  { %v92_v7 = vadd.f32 %v85_v5, %v22_v4  ;;  %v144_v8 = vpop.f32.mrb[1].mxu0 }
  0xde   :  { %v88_v9 = vpop.f32.mrb[2].mxu0 }
  0xdf   :  { %95 = vst.msk [vmem:[#allocation2] sm:$0xff] %vm19_vm0, %v92_v7  ;;  %v93_v10 = vadd.f32 %v88_v9, %v23_v6  ;;  %v145_v11 = vpop.f32.mrb[3].mxu0 }
  0xe1   :  { %96 = vst.msk [vmem:[#allocation2 + $0x8] sm:$0xff] %vm19_vm0, %v93_v10 }
  0xe6   :  { %v100_v13 = vld [vmem:[#allocation2] sm:$0xff] }
  0xe7   :  { %v109_v14 = vadd.f32 %v130_v12, %v100_v13 }
  0xe8   :  { %v101_v15 = vld [vmem:[#allocation2 + $0x8] sm:$0xff] }
  0xe9   :  { %v133_v16 = vpack.c.bf16 %v109_v14, %v109_v14  ;;  %v110_v17 = vadd.f32 %v130_v12, %v101_v15 }
  0xeb   :  { %120 = vst.msk [vmem:[%s198_s3] sm:$0xf] %vm119_vm3, %v133_v16  ;;  %v134_v18 = vpack.c.bf16 %v110_v17, %v110_v17 }
  0xed   :  { %121 = vst.msk [vmem:[%s198_s3 + $0x4] sm:$0xf] %vm119_vm3, %v134_v18 }

// kernel: sanskrit_llm_forward.77
= control target key start
LH: loop header
LB: loop body
LE: loop exit
PB: predicated region body
PF: predicated region fallthrough
CT: control target
= control target key end

     0   :  { %v176_v1 = vmov 0.0   ;;  %vm177_vm0 = vmmov 0   ;;  %s225_s0 = inlined_call_operand.vmem [shape: bf16[16,32], index: 0, kind: input, shape index: {}]   ;;  %s226_s1 = inlined_call_operand.vmem [shape: bf16[32,128], index: 1, kind: input, shape index: {}]   ;;  %s227_s2 = inlined_call_operand.vmem [shape: f32[1,128], index: 2, kind: input, shape index: {}]   ;;  %s228_s3 = inlined_call_operand.hbm [shape: f32[16,128], index: 3, kind: output, shape index: {}]  }
   0x1   :  { %v149_v0 = vld [vmem:[%s226_s1] sm:$0xff]   ;;  %136 = vmatprep.subr.bf16.mxu0 %v176_v1  ;;  %v150_v2 = vld [vmem:[%s226_s1 + $0x8] sm:$0xff]   ;;  %140 = vmatprep.mubr.msk.bf16.mxu0 %vm177_vm0, %v176_v1 }
   0x2   :  { %137 = vmatpush3.bf16.msra.mxu0 %v149_v0 }
   0x3   :  { %138 = vmatprep.subr.bf16.mxu0 %v176_v1 }
   0x4   :  { %8 = vsyncpa [#allocation4], 0  ;;  %v151_v3 = vld [vmem:[%s225_s0] sm:$0xff]   ;;  %vm47_vm1 = vcmask 261120   ;;  %s178_s20 = smov [#allocation3]  }
   0x5   :  { %v132_v4 = vld [vmem:[%s227_s2] ss:$0 sm:$0xff]  ;;  %s117_s21 = sshll.u32 %s178_s20, 4  ;;  %s118_s21 = int_to_ptr.vmem [resolvable:$true] %s117_s21 }
   0x6   :  { %139 = vmatpush3.bf16.msra.mxu0 %v150_v2  ;;  %s152_s1 = scalar_lea.vmem %s118_s21, 256  ;;  %p157_p1 = scmp.lt.s32.totalorder %s118_s21, %s118_s21 }
   0x7   :  { %p153_p0 = scmp.ne.s32.totalorder %s118_s21, %s152_s1  ;;  %p158_p2 = scmp.lt.s32.totalorder %s152_s1, %s152_s1 }
   0x9   :  { %141 = vmatmul.mubr.msk.bf16.vlgmr.msra.gmra.mrb[0].mxu0 %vm47_vm1, %v151_v3  ;;  %p159_p3 = por %p158_p2, %p157_p1 }
   0xb   :  { %p160_p4 = pnand %p159_p3, %p153_p0 }
  0xdc   :  { %v85_v5 = vpop.f32.mrb[0].mxu0 }
  0xdd   :  { %v108_v6 = vadd.f32 %v132_v4, %v85_v5  ;;  %v142_v7 = vpop.f32.mrb[1].mxu0 }
  0xde   :  { %v88_v8 = vpop.f32.mrb[2].mxu0 }
  0xdf   :  { %110 = vst [vmem:[#allocation3] sm:$0xff] %v108_v6  ;;  %v109_v9 = vadd.f32 %v132_v4, %v88_v8  ;;  %v143_v10 = vpop.f32.mrb[3].mxu0 }
  0xe1   :  { %111 = vst [vmem:[#allocation3 + $0x8] sm:$0xff] %v109_v9 }
  0xe2   :  { %163 = shalt.err (!%p160_p4)
}
  0xe3   :  { %s164_s22 = scalar_lea.hbm %s228_s3, 256 }
  0xe4   :  { %p165_p5 = scmp.ne.s32.totalorder %s228_s3, %s164_s22  ;;  %p168_p6 = scmp.lt.u32.totalorder %s164_s22, %s228_s3 }
  0xe6   :  { %p170_p7 = pnand %p168_p6, %p165_p5 }
  0xe8   :  { %173 = shalt.err (!%p170_p7)
}
  0xe9   :  { %s179_s27 = smov 128   ;;  %s180_s28 = smov 8  }
  0xea   :  { %123 = dma.vmem_to_hbm [thread:$0]  %s118_s21, 256, %s228_s3, [#allocation4], %s179_s27, %s179_s27, %s180_s28  }
  0xeb   :  { %174 = dma.done.wait [#allocation4], 256  }
  0xec   :  { %175 = vsyncadd [#allocation4], 4294967040 }
  0xed   :  { %127 = vsyncpa [#allocation4], 1 }

// kernel: sanskrit_llm_forward.54
= control target key start
LH: loop header
LB: loop body
LE: loop exit
PB: predicated region body
PF: predicated region fallthrough
CT: control target
= control target key end

     0   :  { %s965_s15 = smov 0   ;;  %s1069_s0 = inlined_call_operand.vmem [shape: bf16[2,8,32], index: 0, kind: input, shape index: {}]   ;;  %s1070_s1 = inlined_call_operand.vmem [shape: bf16[2,8,32], index: 1, kind: input, shape index: {}]   ;;  %s1071_s2 = inlined_call_operand.vmem [shape: bf16[2,8,32], index: 2, kind: input, shape index: {}]   ;;  %s1072_s3 = inlined_call_operand.vmem [shape: f32[2,8,8], index: 3, kind: input, shape index: {}]   ;;  %s1073_s4 = inlined_call_operand.vmem [shape: bf16[2,8,32], index: 4, kind: output, shape index: {}]  }
   0x1 LB: > { %s804_s16 = sadd.s32 4294967295, %s930_s15   ;;  %p808_p0 = scmp.ge.s32.totalorder %s930_s15, 1  ;;  %s930_s15 = sphi %s965_s15, %s14_s15  }
   0x2   : > { %p188_p1 = scmp.lt.s32.totalorder %s930_s15, 3 }
   0x4   : > { %p189_p2 = pnand %p808_p0, %p188_p1 }
   0x5   : > { %p224_p3 = scmp.lt.s32.totalorder (!%p189_p2), %s804_s16, 1  ;;  %v932_v0 = vmov (!%p189_p2), 0.0   ;;  %vm933_vm0 = vmmov (!%p189_p2), 0   ;;  %vm252_vm1 = vcmask (!%p189_p2), 64512   ;;  %s934_s28 = smov (!%p189_p2), 120   ;;  %vm314_vm2 = vcmask (!%p189_p2), 1043456  }
   0x6   : > { %192 = sbr.rel (%p189_p2) target bundleno = 1477 (0x5c5), region = 36  ;;  %842 = vmatprep.subr.bf16.mxu0 (!%p189_p2), %v932_v0  ;;  %844 = vmatprep.mubr.msk.bf16.mxu0 (!%p189_p2), %vm933_vm0, %v932_v0  ;;  %s935_s29 = smov (!%p189_p2), 112   ;;  %vm708_vm3 = vcmask (!%p189_p2), 130048   ;;  %vm710_vm4 = vcmask (!%p189_p2), 195584   ;;  %vm713_vm5 = vcmask (!%p189_p2), 257024  }
   0x7   : > { %848 = vmatprep.subr.bf16.mxu1 (!%p189_p2), %v932_v0  ;;  %850 = vmatprep.mubr.msk.bf16.mxu1 (!%p189_p2), %vm933_vm0, %v932_v0  ;;  %s936_s30 = smov (!%p189_p2), 104   ;;  %s937_s8 = smov (!%p189_p2), 8  }
   0x8   : > { %s938_s9 = smov (!%p189_p2), 16   ;;  %s939_s10 = smov (!%p189_p2), 24  }
   0xd   : > { %s1075_s16 = smov (!%p224_p3, %s804_s16), 1 }
   0xe   : > { %s979_s17 = sshll.u32 %s1075_s16, 2  ;;  %s812_s24 = sshll.u32 %s1075_s16, 3 }
   0xf   : > { %s231_s20 = scalar_lea.vmem %s1070_s1, %s979_s17  ;;  %s227_s23 = scalar_lea.vmem %s1069_s0, %s979_s17 }
  0x10   : > { %v246_v1 = vld [vmem:[%s231_s20] sm:$0xf]  ;;  %s239_s27 = scalar_lea.vmem %s1072_s3, %s812_s24  ;;  %s235_s7 = scalar_lea.vmem %s1071_s2, %s979_s17 }
  0x11   : > { %v245_v2 = vld [vmem:[%s227_s23] sm:$0xf]  ;;  %v257_v3 = vsel %vm252_vm1, %v246_v1, 0  ;;  %v816_v14 = vcombine.low %v246_v1, %v246_v1  ;;  %s243_s13 = scalar_lea.vmem %s1073_s4, %s979_s17 }
  0x12   : > { %v249_v4 = vunpack.c.l.bf16 %v245_v2  ;;  %843 = vmatpush3.bf16.xpose.msra.mxu0 %v257_v3  ;;  %v997_v7 = vld [vmem:[%s239_s27] sm:$0xff] }
  0x13   : > { %860 = vmatprep.subr.bf16.mxu0 %v932_v0  ;;  %364 = vrot.lane.b32.xlu1 %v816_v14, %s934_s28  ;;  %v1011_v20 = vld [vmem:[%s235_s7] sm:$0xf] }
  0x14   : > { %v250_v5 = vmul.f32 0.35355338, %v249_v4  ;;  %v316_v21 = vsel %vm314_vm2, %v1011_v20, 0  ;;  %v818_v4 = vcombine.low %v1011_v20, %v1011_v20 }
  0x15   : > { %849 = vmatpush3.bf16.msra.mxu1 %v316_v21 }
  0x16   : > { %v251_v6 = vpack.c.bf16 %v250_v5, %v250_v5  ;;  %854 = vmatprep.subr.bf16.mxu1 %v932_v0 }
  0x18   : > { %359 = vrot.lane.b32.xlu1 %v251_v6, %s934_s28 }
  0x19   : > { %845 = vmatmul.mubr.msk.bf16.vlgmr.msra.gmra.mrb[0].mxu0 %vm252_vm1, %v251_v6 }
  0x1a   : > { %862 = vmatprep.mubr.msk.bf16.mxu0 %vm933_vm0, %v932_v0 }
  0x1c   : > { %475 = vrot.lane.b32.xlu1 %v251_v6, %s935_s29 }
  0x20   : > { %587 = vrot.lane.b32.xlu1 %v816_v14, %s936_s30 }
  0x24   : > { %585 = vrot.lane.b32.xlu1 %v251_v6, %s936_s30 }
  0x85   : > { %v365_v24 = vpop.permute.xlu1 %364 }
  0x86   : > { %v370_v26 = vsel %vm252_vm1, %v365_v24, 0 }
  0x8a   : > { %v360_v28 = vpop.permute.xlu1 %359 }
  0x8e   : > { %v476_v30 = vpop.permute.xlu1 %475 }
  0x92   : > { %v588_v32 = vpop.permute.xlu1 %587 }
  0x93   : > { %v593_v33 = vsel %vm252_vm1, %v588_v32, 0 }
  0x96   : > { %v586_v34 = vpop.permute.xlu1 %585 }
  0xec   : > { %v293_v8 = vpop.f32.mrb[0].mxu0 }
  0xed   : > { %v294_v9 = vadd.f32 %v293_v8, %v997_v7  ;;  %v846_v10 = vpop.f32.mrb[1].mxu0 }
  0xee   : > { %v296_v11 = vpop.f32.mrb[2].mxu0 }
  0xef   : > { %v847_v12 = vpop.f32.mrb[3].mxu0  ;;  %v299_v13 = vsel %vm252_vm1, %v294_v9, -inf }
  0xf0   : > { %300 = vmax.xlane.f32.xlu0 %v299_v13 }
 0x17d   : > { %v301_v15 = vpop.xlane.xlu0 %300 }
 0x17e   : > { %v302_v16 = vsub.f32 %v294_v9, %v301_v15 }
 0x180   : > { %v303_v17 = vmul.f32 1.442695, %v302_v16 }
 0x182   : > { %908 = vpow2.f32 %v303_v17 }
 0x18c   : > { %v909_v18 = vpop.eup %908 }
 0x18d   : > { %v305_v19 = vsel %vm252_vm1, %v909_v18, 0.0 }
 0x18e   : > { %306 = vadd.xlane.f32.xlu0 %v305_v19 }
 0x1a4   : > { %477 = vrot.lane.b32.xlu0 %v816_v14, %s935_s29 }
 0x21b   : > { %v307_v22 = vpop.xlane.xlu0 %306 }
 0x21c   : > { %910 = vrcp.f32 %v307_v22 }
 0x21f   : > { %v478_v29 = vpop.permute.xlu0 %477 }
 0x220   : > { %v483_v31 = vsel %vm252_vm1, %v478_v29, 0 }
 0x226   : > { %v911_v23 = vpop.eup %910 }
 0x227   : > { %v309_v25 = vmul.f32 %v911_v23, %v909_v18 }
 0x229   : > { %v310_v27 = vpack.c.bf16 %v309_v25, %v309_v25 }
 0x22b   : > { %851 = vmatmul.mubr.msk.bf16.vlgmr.msra.gmra.mrb[0].mxu1 %vm252_vm1, %v310_v27 }
 0x22c   : > { %855 = vmatpush3.bf16.xpose.msra.mxu1 %v370_v26  ;;  %856 = vmatprep.mubr.msk.bf16.mxu1 %vm933_vm0, %v932_v0 }
 0x22d   : > { %866 = vmatprep.subr.bf16.mxu1 %v932_v0 }
 0x233   : > { %857 = vmatmul.mubr.msk.bf16.vlgmr.msra.gmra.mrb[4].mxu1 %vm252_vm1, %v360_v28 }
 0x234   : > { %867 = vmatpush3.bf16.xpose.msra.mxu1 %v483_v31  ;;  %868 = vmatprep.mubr.msk.bf16.mxu1 %vm933_vm0, %v932_v0 }
 0x235   : > { %878 = vmatprep.subr.bf16.mxu1 %v932_v0 }
 0x23b   : > { %869 = vmatmul.mubr.msk.bf16.vlgmr.msra.gmra.mrb[8].mxu1 %vm252_vm1, %v476_v30 }
 0x23c   : > { %879 = vmatpush3.bf16.xpose.msra.mxu1 %v593_v33  ;;  %880 = vmatprep.mubr.msk.bf16.mxu1 %vm933_vm0, %v932_v0 }
 0x243   : > { %881 = vmatmul.mubr.msk.bf16.vlgmr.msra.gmra.mrb[12].mxu1 %vm252_vm1, %v586_v34 }
 0x2fe   : > { %v1032_v35 = vpop.f32.mrb[0].mxu1 }
 0x2ff   : > { %v852_v36 = vpop.f32.mrb[1].mxu1 }
 0x300   : > { %v355_v37 = vpop.f32.mrb[2].mxu1 }
 0x301   : > { %v853_v38 = vpop.f32.mrb[3].mxu1 }
 0x306   : > { %v406_v39 = vpop.f32.mrb[4].mxu1 }
 0x307   : > { %v407_v40 = vadd.f32 %v406_v39, %v997_v7  ;;  %v858_v41 = vpop.f32.mrb[5].mxu1 }
 0x308   : > { %v409_v42 = vpop.f32.mrb[6].mxu1 }
 0x309   : > { %v859_v43 = vpop.f32.mrb[7].mxu1  ;;  %v412_v44 = vsel %vm252_vm1, %v407_v40, -inf }
 0x30a   : > { %413 = vmax.xlane.f32.xlu1 %v412_v44 }
 0x30e   : > { %v519_v45 = vpop.f32.mrb[8].mxu1 }
 0x30f   : > { %v520_v46 = vadd.f32 %v519_v45, %v997_v7  ;;  %v870_v47 = vpop.f32.mrb[9].mxu1 }
 0x310   : > { %v522_v48 = vpop.f32.mrb[10].mxu1 }
 0x311   : > { %v525_v49 = vsel %vm252_vm1, %v520_v46, -inf  ;;  %v871_v50 = vpop.f32.mrb[11].mxu1 }
 0x312   : > { %526 = vmax.xlane.f32.xlu0 %v525_v49 }
 0x316   : > { %v629_v51 = vpop.f32.mrb[12].mxu1 }
 0x317   : > { %v630_v52 = vadd.f32 %v629_v51, %v997_v7  ;;  %v882_v53 = vpop.f32.mrb[13].mxu1 }
 0x318   : > { %v632_v54 = vpop.f32.mrb[14].mxu1 }
 0x319   : > { %v635_v55 = vsel %vm252_vm1, %v630_v52, -inf  ;;  %v883_v56 = vpop.f32.mrb[15].mxu1 }
 0x31a   : > { %636 = vmax.xlane.f32.xlu1 %v635_v55 }
 0x397   : > { %v414_v57 = vpop.xlane.xlu1 %413 }
 0x398   : > { %v415_v58 = vsub.f32 %v407_v40, %v414_v57 }
 0x39a   : > { %v416_v59 = vmul.f32 1.442695, %v415_v58 }
 0x39c   : > { %912 = vpow2.f32 %v416_v59 }
 0x39f   : > { %v527_v60 = vpop.xlane.xlu0 %526 }
 0x3a0   : > { %v528_v61 = vsub.f32 %v520_v46, %v527_v60 }
 0x3a2   : > { %v529_v62 = vmul.f32 1.442695, %v528_v61 }
 0x3a4   : > { %914 = vpow2.f32 %v529_v62 }
 0x3a6   : > { %v913_v63 = vpop.eup %912 }
 0x3a7   : > { %v418_v1 = vsel %vm252_vm1, %v913_v63, 0.0  ;;  %v637_v5 = vpop.xlane.xlu1 %636 }
 0x3a8   : > { %419 = vadd.xlane.f32.xlu1 %v418_v1  ;;  %v638_v6 = vsub.f32 %v630_v52, %v637_v5 }
 0x3aa   : > { %v639_v7 = vmul.f32 1.442695, %v638_v6 }
 0x3ac   : > { %916 = vpow2.f32 %v639_v7 }
 0x3ae   : > { %v915_v2 = vpop.eup %914 }
 0x3af   : > { %v531_v3 = vsel %vm252_vm1, %v915_v2, 0.0 }
 0x3b0   : > { %532 = vadd.xlane.f32.xlu0 %v531_v3 }
 0x3b6   : > { %v917_v8 = vpop.eup %916 }
 0x3b7   : > { %v641_v9 = vsel %vm252_vm1, %v917_v8, 0.0 }
 0x3b9   : > { %537 = vrot.lane.b32.xlu1 %v818_v4, %s935_s29 }
 0x3c6   : > { %427 = vrot.lane.b32.xlu0 %v818_v4, %s934_s28 }
 0x3dd   : > { %642 = vadd.xlane.f32.xlu1 %v641_v9 }
 0x3ee   : > { %647 = vrot.lane.b32.xlu1 %v818_v4, %s936_s30 }
 0x435   : > { %v420_v10 = vpop.xlane.xlu1 %419 }
 0x436   : > { %918 = vrcp.f32 %v420_v10 }
 0x439   : > { %v538_v16 = vpop.permute.xlu1 %537 }
 0x43a   : > { %v543_v18 = vsel %vm314_vm2, %v538_v16, 0 }
 0x43d   : > { %v533_v11 = vpop.xlane.xlu0 %532 }
 0x43e   : > { %920 = vrcp.f32 %v533_v11 }
 0x440   : > { %v919_v12 = vpop.eup %918 }
 0x441   : > { %v422_v13 = vmul.f32 %v919_v12, %v913_v63  ;;  %v428_v14 = vpop.permute.xlu0 %427 }
 0x442   : > { %v433_v15 = vsel %vm314_vm2, %v428_v14, 0 }
 0x443   : > { %861 = vmatpush3.bf16.msra.mxu0 %v433_v15  ;;  %v423_v17 = vpack.c.bf16 %v422_v13, %v422_v13 }
 0x444   : > { %872 = vmatprep.subr.bf16.mxu0 %v932_v0 }
 0x446   : > { %863 = vmatmul.mubr.msk.bf16.vlgmr.msra.gmra.mrb[4].mxu0 %vm252_vm1, %v423_v17 }
 0x447   : > { %873 = vmatpush3.bf16.msra.mxu0 %v543_v18  ;;  %874 = vmatprep.mubr.msk.bf16.mxu0 %vm933_vm0, %v932_v0 }
 0x448   : > { %v921_v19 = vpop.eup %920  ;;  %884 = vmatprep.subr.bf16.mxu0 %v932_v0 }
 0x449   : > { %v535_v20 = vmul.f32 %v921_v19, %v915_v2 }
 0x44b   : > { %v536_v21 = vpack.c.bf16 %v535_v20, %v535_v20 }
 0x44e   : > { %875 = vmatmul.mubr.msk.bf16.vlgmr.msra.gmra.mrb[8].mxu0 %vm252_vm1, %v536_v21 }
 0x44f   : > { %886 = vmatprep.mubr.msk.bf16.mxu0 %vm933_vm0, %v932_v0 }
 0x46a   : > { %v643_v22 = vpop.xlane.xlu1 %642 }
 0x46b   : > { %922 = vrcp.f32 %v643_v22 }
 0x46e   : > { %v648_v23 = vpop.permute.xlu1 %647 }
 0x46f   : > { %v653_v24 = vsel %vm314_vm2, %v648_v23, 0 }
 0x470   : > { %885 = vmatpush3.bf16.msra.mxu0 %v653_v24 }
 0x475   : > { %v923_v25 = vpop.eup %922 }
 0x476   : > { %v645_v26 = vmul.f32 %v923_v25, %v917_v8 }
 0x478   : > { %v646_v27 = vpack.c.bf16 %v645_v26, %v645_v26 }
 0x47a   : > { %887 = vmatmul.mubr.msk.bf16.vlgmr.msra.gmra.mrb[12].mxu0 %vm252_vm1, %v646_v27 }
 0x519   : > { %v469_v28 = vpop.f32.mrb[4].mxu0 }
 0x51a   : > { %696 = vrot.lane.b32.xlu0 %v469_v28, %s937_s8  ;;  %v864_v29 = vpop.f32.mrb[5].mxu0 }
 0x51b   : > { %v472_v30 = vpop.f32.mrb[6].mxu0 }
 0x51c   : > { %v865_v31 = vpop.f32.mrb[7].mxu0 }
 0x521   : > { %v579_v32 = vpop.f32.mrb[8].mxu0 }
 0x522   : > { %700 = vrot.lane.b32.xlu1 %v579_v32, %s938_s9  ;;  %v876_v0 = vpop.f32.mrb[9].mxu0 }
 0x523   : > { %v582_v33 = vpop.f32.mrb[10].mxu0 }
 0x524   : > { %v877_v34 = vpop.f32.mrb[11].mxu0 }
 0x54d   : > { %v689_v36 = vpop.f32.mrb[12].mxu0 }
 0x54e   : > { %704 = vrot.lane.b32.xlu0 %v689_v36, %s939_s10  ;;  %v888_v37 = vpop.f32.mrb[13].mxu0 }
 0x54f   : > { %v692_v38 = vpop.f32.mrb[14].mxu0 }
 0x550   : > { %v889_v39 = vpop.f32.mrb[15].mxu0 }
 0x58c   : > { %v697_v40 = vpop.permute.xlu0 %696 }
 0x58d   : > { %v707_v42 = vsel %vm252_vm1, %v1032_v35, %v697_v40 }
 0x594   : > { %v701_v41 = vpop.permute.xlu1 %700 }
 0x595   : > { %v709_v43 = vsel %vm708_vm3, %v707_v42, %v701_v41 }
 0x5c0   : > { %v705_v44 = vpop.permute.xlu0 %704 }
 0x5c1   : > { %v711_v45 = vsel %vm710_vm4, %v709_v43, %v705_v44 }
 0x5c2   : > { %v712_v46 = vpack.c.bf16 %v711_v45, %v711_v45 }
 0x5c4   : > { %714 = vst.msk [vmem:[%s243_s13] sm:$0xf] %vm713_vm5, %v712_v46 }
 0x5c5 PF: > { %s14_s15 = sadd.s32 1, %s930_s15  }
 0x5c6   : > { %p11_p4 = scmp.ge.s32.totalorder %s14_s15, 4  }
 0x5c8   :  { %13 = sbr.rel (!%p11_p4) target bundleno = 1 (0x1), region = 75 }

</bundles_post_ra>
